<compile_context>
chip_gen: v5e
topology: v5e:2x2
jax: 0.10.0
libtpu: 0.0.40
codegen_flags: <defaults>
</compile_context>

<pallas_src>
import functools

import jax
import jax.numpy as jnp
from jax.experimental import pallas as pl
from jax.experimental.pallas import tpu as pltpu

# ---- model configuration (small synthetic shapes) ----
B, S, H = 2, 8, 32
BS = B * S
NUM_HEADS = 2
HEAD_DIM = H // NUM_HEADS
FFN = 64
VOCAB = 50
VOCAB_PAD = 64                    # padded vocab rows for a clean one-hot matmul
NUM_LAYERS = 2
NUM_CLASSES = 2
LANES = 128                       # lane-dense padding for logits / slabs
LORA_R, LORA_ALPHA = 8, 16
LORA_SCALE = LORA_ALPHA / LORA_R
LOG2_S = S.bit_length() - 1
assert (1 << LOG2_S) == S, "S must be a power of two for the in-kernel mask"


# ---------------- fused Pallas kernel (single step, whole forward) ----------------

def _fused_forward_kernel(ids_ref, amask_ref, embed_ref,
                          wattn_ref, wffn_ref, misc_ref, o_ref):
    f32 = jnp.float32
    bf16 = jnp.bfloat16
    scale = 1.0 / (HEAD_DIM ** 0.5)
    L = NUM_LAYERS

    def layernorm(v, g, b):
        mu = jnp.mean(v, axis=-1, keepdims=True)
        var = jnp.mean(jnp.square(v - mu), axis=-1, keepdims=True)
        return (v - mu) * jax.lax.rsqrt(var + 1e-5) * g + b

    # ---- embedding gather fused as a one-hot matmul (MXU) ----
    vocab_iota = jax.lax.broadcasted_iota(jnp.int32, (BS, VOCAB_PAD), 1)
    onehot = jnp.where(ids_ref[...] == vocab_iota, 1.0, 0.0).astype(f32)   # [BS, VOCAB_PAD]
    x = jnp.dot(onehot, embed_ref[...], preferred_element_type=f32)        # [BS, H]

    # ---- block-diagonal causal + padding additive mask over the flat batch ----
    ridx = jax.lax.broadcasted_iota(jnp.int32, (BS, BS), 0)
    cidx = jax.lax.broadcasted_iota(jnp.int32, (BS, BS), 1)
    same_batch = jnp.right_shift(ridx, LOG2_S) == jnp.right_shift(cidx, LOG2_S)
    causal = ridx >= cidx
    pad_ok = amask_ref[...] > 0                                             # [1, BS]
    allowed = same_batch & causal & pad_ok
    add_mask = jnp.where(allowed, 0.0, -1e9).astype(f32)                    # [BS, BS]

    for l in range(L):                       # static unroll over layers
        # --- unpack per-layer vectors from the packed [40,128] misc slab ---
        ln1_g = misc_ref[l:l + 1, 0:H]
        ln1_b = misc_ref[l:l + 1, H:2 * H]
        ln2_g = misc_ref[l:l + 1, 2 * H:3 * H]
        ln2_b = misc_ref[l:l + 1, 3 * H:4 * H]
        qkv_b = misc_ref[L + l:L + l + 1, 0:3 * H]
        o_b = misc_ref[L + l:L + l + 1, 3 * H:4 * H]
        fc1_b = misc_ref[2 * L + l:2 * L + l + 1, 0:FFN]
        fc2_b = misc_ref[2 * L + l:2 * L + l + 1, FFN:FFN + H]

        # --- attention block (pre-LN), fused QKV projection ---
        h = layernorm(x, ln1_g, ln1_b)                                      # [BS, H]
        qkv = jnp.dot(h.astype(bf16), wattn_ref[l, :, 0:3 * H],
                      preferred_element_type=f32) + qkv_b                   # [BS, 3H]

        attn_proj = jnp.zeros((BS, H), f32)
        for hd in range(NUM_HEADS):          # static unroll over heads
            lo = hd * HEAD_DIM
            qh = qkv[:, lo:lo + HEAD_DIM]
            kh = qkv[:, H + lo:H + lo + HEAD_DIM]
            vh = qkv[:, 2 * H + lo:2 * H + lo + HEAD_DIM]
            s = jax.lax.dot_general(qh, kh, (((1,), (1,)), ((), ())),
                                    preferred_element_type=f32) * scale
            s = s + add_mask
            s = s - jnp.max(s, axis=-1, keepdims=True)
            p = jnp.exp(s)
            p = p / jnp.sum(p, axis=-1, keepdims=True)                      # exact softmax
            head = jnp.dot(p, vh, preferred_element_type=f32)               # [BS, HEAD_DIM]
            # accumulate directly into the output projection (no lane concat)
            attn_proj = attn_proj + jnp.dot(
                head.astype(bf16),
                wattn_ref[l, lo:lo + HEAD_DIM, 3 * H:4 * H],
                preferred_element_type=f32)
        x = x + attn_proj + o_b

        # --- feed-forward block (pre-LN) ---
        h2 = layernorm(x, ln2_g, ln2_b)
        f = jnp.dot(h2.astype(bf16), wffn_ref[l, 0:H, :],
                    preferred_element_type=f32) + fc1_b                     # [BS, FFN]
        # TODO(synk): tanh-approximate GELU; torch.nn.GELU defaults to the exact erf form.
        f = jax.nn.gelu(f, approximate=True)
        x = x + jnp.dot(f.astype(bf16), wffn_ref[l, H:H + FFN, 0:H],
                        preferred_element_type=f32) + fc2_b

    # lm_head = Identity → final hidden states are the "logits" fed to the cls head.
    lnf_g = misc_ref[3 * L:3 * L + 1, 0:H]
    lnf_b = misc_ref[3 * L:3 * L + 1, H:2 * H]
    hidden = layernorm(x, lnf_g, lnf_b)                                     # [BS, H]

    # Classification head on the last position of each sequence ([:, -1, :]).
    last = jnp.concatenate(
        [hidden[b * S + S - 1: b * S + S, :] for b in range(B)], axis=0)    # [B, H]
    cls_b_pad = misc_ref[3 * L + 1:3 * L + 2, :]                            # [1, 128]
    cls_w_pad = misc_ref[3 * L + 2:3 * L + 2 + H, :]                        # [H, 128]
    o_ref[...] = (jnp.dot(last, cls_w_pad, preferred_element_type=f32)
                  + cls_b_pad)                                              # [B, 128]


# ---------------- wrapper ----------------

@functools.partial(jax.jit)
def forward(prepped, input_ids, attention_mask):
    ids_flat = input_ids.reshape(BS, 1).astype(jnp.int32)
    amask_flat = attention_mask.reshape(1, BS).astype(jnp.int32)
    out = pl.pallas_call(
        _fused_forward_kernel,
        out_shape=jax.ShapeDtypeStruct((B, LANES), jnp.float32),
    )(ids_flat, amask_flat,
      prepped["embed"], prepped["w_attn"], prepped["w_ffn"], prepped["misc"])
    return out[:, :NUM_CLASSES]                                             # [B, NUM_CLASSES]


# ---------------- parameter init (deterministic, synthetic) ----------------

def _init_lora_linear(key, d_in, d_out):
    k1, k2, k3, k4 = jax.random.split(key, 4)
    return {
        "w": 0.05 * jax.random.normal(k1, (d_in, d_out), jnp.float32),
        "a": 0.05 * jax.random.normal(k2, (d_in, LORA_R), jnp.float32),
        "b": 0.05 * jax.random.normal(k3, (LORA_R, d_out), jnp.float32),
        "bias": 0.01 * jax.random.normal(k4, (1, d_out), jnp.float32),
    }


def init_params(key):
    keys = jax.random.split(key, 3 + NUM_LAYERS)
    params = {
        "embed": 0.05 * jax.random.normal(keys[0], (VOCAB, H), jnp.float32),
        "lnf_g": jnp.ones((1, H), jnp.float32),
        "lnf_b": jnp.zeros((1, H), jnp.float32),
        # TODO(synk): exact ClassificationHead architecture is not in the source; linear head used.
        "cls_w": 0.05 * jax.random.normal(keys[1], (H, NUM_CLASSES), jnp.float32),
        "cls_b": jnp.zeros((1, NUM_CLASSES), jnp.float32),
        "layers": [],
    }
    for l in range(NUM_LAYERS):
        lk = jax.random.split(keys[3 + l], 6)
        params["layers"].append({
            "ln1_g": jnp.ones((1, H), jnp.float32),
            "ln1_b": jnp.zeros((1, H), jnp.float32),
            "q": _init_lora_linear(lk[0], H, H),
            "k": _init_lora_linear(lk[1], H, H),
            "v": _init_lora_linear(lk[2], H, H),
            "o": _init_lora_linear(lk[3], H, H),
            "ln2_g": jnp.ones((1, H), jnp.float32),
            "ln2_b": jnp.zeros((1, H), jnp.float32),
            "fc1": _init_lora_linear(lk[4], H, FFN),
            "fc2": _init_lora_linear(lk[5], FFN, H),
        })
    return params


def prepare_params(params):
    """Fold LoRA (W + alpha/r * A@B), fuse QKV+O, and pack everything into 4 slabs.

    Slabs handed to the kernel:
      embed  : [VOCAB_PAD, H]        f32   (zero-padded rows VOCAB..VOCAB_PAD)
      w_attn : [L, H, 128]           bf16  lanes 0:96 = fused QKV weight, 96:128 = O weight
      w_ffn  : [L, H+FFN, FFN]       bf16  rows 0:H = fc1, rows H:H+FFN (lanes 0:H) = fc2
      misc   : [40, 128]             f32   rows 0..L-1   : ln1_g|ln1_b|ln2_g|ln2_b
                                           rows L..2L-1  : qkv_b|o_b
                                           rows 2L..3L-1 : fc1_b|fc2_b|pad
                                           row 3L        : lnf_g|lnf_b|pad
                                           row 3L+1      : cls_b (padded to 128)
                                           rows 3L+2..+H : cls_w (padded to 128 lanes)
    """
    # TODO(synk): LoRA dropout (p=0.1) only affects training; inference forward folds A@B directly.
    def fold(p):
        return p["w"] + LORA_SCALE * (p["a"] @ p["b"]), p["bias"]

    wattn_layers, wffn_layers = [], []
    ln_rows, bias_a_rows, bias_b_rows = [], [], []
    for lyr in params["layers"]:
        wq, bq = fold(lyr["q"])
        wk, bk = fold(lyr["k"])
        wv, bv = fold(lyr["v"])
        wo, bo = fold(lyr["o"])
        w1, b1 = fold(lyr["fc1"])
        w2, b2 = fold(lyr["fc2"])

        wattn_layers.append(jnp.concatenate([wq, wk, wv, wo], axis=1))      # [H, 4H=128]
        ffn = jnp.zeros((H + FFN, FFN), jnp.float32)
        ffn = ffn.at[:H, :].set(w1)
        ffn = ffn.at[H:, :H].set(w2)
        wffn_layers.append(ffn)                                             # [H+FFN, FFN]

        ln_rows.append(jnp.concatenate(
            [lyr["ln1_g"], lyr["ln1_b"], lyr["ln2_g"], lyr["ln2_b"]], axis=1))      # [1,128]
        bias_a_rows.append(jnp.concatenate([bq, bk, bv, bo], axis=1))               # [1,128]
        bias_b_rows.append(jnp.concatenate(
            [b1, b2, jnp.zeros((1, LANES - FFN - H), jnp.float32)], axis=1))        # [1,128]

    final_row = jnp.concatenate(
        [params["lnf_g"], params["lnf_b"],
         jnp.zeros((1, LANES - 2 * H), jnp.float32)], axis=1)                       # [1,128]
    cls_b_row = jnp.zeros((1, LANES), jnp.float32).at[:, :NUM_CLASSES].set(params["cls_b"])
    cls_w_pad = jnp.zeros((H, LANES), jnp.float32).at[:, :NUM_CLASSES].set(params["cls_w"])

    misc = jnp.concatenate(
        ln_rows + bias_a_rows + bias_b_rows + [final_row, cls_b_row, cls_w_pad], axis=0)
    assert misc.shape == (3 * NUM_LAYERS + 2 + H, LANES)                    # (40, 128)

    embed_pad = jnp.zeros((VOCAB_PAD, H), jnp.float32).at[:VOCAB, :].set(params["embed"])

    return {
        "embed": embed_pad,
        "w_attn": jnp.stack(wattn_layers, axis=0).astype(jnp.bfloat16),     # [L, H, 128]
        "w_ffn": jnp.stack(wffn_layers, axis=0).astype(jnp.bfloat16),       # [L, H+FFN, FFN]
        "misc": misc,                                                       # [40, 128] f32
    }


if __name__ == "__main__":
    key = jax.random.PRNGKey(0)
    pkey, dkey = jax.random.split(key)
    params = init_params(pkey)
    prepped = prepare_params(params)

    input_ids = jax.random.randint(dkey, (B, S), 0, VOCAB, dtype=jnp.int32)
    attention_mask = jnp.array([[1, 1, 1, 1, 1, 1, 1, 1],
                                [1, 1, 1, 1, 1, 1, 0, 0]], dtype=jnp.int32)

    logits = forward(prepped, input_ids, attention_mask)
    logits = jax.block_until_ready(logits)
    assert logits.shape == (B, NUM_CLASSES)
    assert bool(jnp.all(jnp.isfinite(logits)))
    print("KERNEL_OK")
</pallas_src>

<mosaic_0001>
module attributes {stable_mosaic.version = 11 : i64} {
  func.func @_fused_forward_kernel(%arg0: memref<16x1xi32, #tpu.memory_space<vmem>>, %arg1: memref<1x16xi32, #tpu.memory_space<vmem>>, %arg2: memref<64x32xf32, #tpu.memory_space<vmem>>, %arg3: memref<2x32x128xbf16, #tpu.memory_space<vmem>>, %arg4: memref<2x96x64xbf16, #tpu.memory_space<vmem>>, %arg5: memref<40x128xf32, #tpu.memory_space<vmem>>, %arg6: memref<2x128xf32, #tpu.memory_space<vmem>>) attributes {dimension_semantics = [], scalar_prefetch = 0 : i64, scratch_operands = 0 : i64, tpu.core_type = #tpu.core_type<tc>} {
    %0 = tpu.iota {dimensions = array<i32: 1>} : vector<16x64xi32>
    %c0 = arith.constant 0 : index
    %c0_0 = arith.constant 0 : index
    %1 = vector.load %arg0[%c0, %c0_0] : memref<16x1xi32, #tpu.memory_space<vmem>>, vector<16x1xi32>
    %2 = vector.broadcast %1 : vector<16x1xi32> to vector<16x64xi32>
    %3 = arith.cmpi eq, %2, %0 : vector<16x64xi32>
    %cst = arith.constant 1.000000e+00 : f32
    %cst_1 = arith.constant 0.000000e+00 : f32
    %4 = vector.broadcast %cst : f32 to vector<16x64xf32>
    %5 = vector.broadcast %cst_1 : f32 to vector<16x64xf32>
    %6 = arith.select %3, %4, %5 : vector<16x64xi1>, vector<16x64xf32>
    %c0_2 = arith.constant 0 : index
    %c0_3 = arith.constant 0 : index
    %7 = vector.load %arg2[%c0_2, %c0_3] : memref<64x32xf32, #tpu.memory_space<vmem>>, vector<64x32xf32>
    %cst_4 = arith.constant dense<0.000000e+00> : vector<16x32xf32>
    %8 = tpu.matmul %6, %7, %cst_4 {dimension_numbers = #tpu.dot_dimension_numbers<[1], [0], [0], [1], [0, 0, 1, 1], [], []>} : vector<16x64xf32>, vector<64x32xf32>, vector<16x32xf32> -> vector<16x32xf32>
    %9 = tpu.iota {dimensions = array<i32: 0>} : vector<16x16xi32>
    %10 = tpu.iota {dimensions = array<i32: 1>} : vector<16x16xi32>
    %c3_i32 = arith.constant 3 : i32
    %11 = vector.broadcast %c3_i32 : i32 to vector<16x16xi32>
    %12 = arith.shrsi %9, %11 : vector<16x16xi32>
    %c3_i32_5 = arith.constant 3 : i32
    %13 = vector.broadcast %c3_i32_5 : i32 to vector<16x16xi32>
    %14 = arith.shrsi %10, %13 : vector<16x16xi32>
    %15 = arith.cmpi eq, %12, %14 : vector<16x16xi32>
    %16 = arith.cmpi sge, %9, %10 : vector<16x16xi32>
    %c0_6 = arith.constant 0 : index
    %c0_7 = arith.constant 0 : index
    %17 = vector.load %arg1[%c0_6, %c0_7] : memref<1x16xi32, #tpu.memory_space<vmem>>, vector<1x16xi32>
    %c0_i32 = arith.constant 0 : i32
    %18 = vector.broadcast %c0_i32 : i32 to vector<1x16xi32>
    %19 = arith.cmpi sgt, %17, %18 : vector<1x16xi32>
    %20 = arith.andi %15, %16 : vector<16x16xi1>
    %21 = vector.broadcast %19 : vector<1x16xi1> to vector<16x16xi1>
    %22 = arith.andi %20, %21 : vector<16x16xi1>
    %cst_8 = arith.constant 0.000000e+00 : f32
    %cst_9 = arith.constant -1.000000e+09 : f32
    %23 = vector.broadcast %cst_8 : f32 to vector<16x16xf32>
    %24 = vector.broadcast %cst_9 : f32 to vector<16x16xf32>
    %25 = arith.select %22, %23, %24 : vector<16x16xi1>, vector<16x16xf32>
    %c0_10 = arith.constant 0 : index
    %c0_11 = arith.constant 0 : index
    %26 = vector.load %arg5[%c0_10, %c0_11] : memref<40x128xf32, #tpu.memory_space<vmem>>, vector<1x32xf32>
    %c0_12 = arith.constant 0 : index
    %c32 = arith.constant 32 : index
    %27 = vector.load %arg5[%c0_12, %c32] : memref<40x128xf32, #tpu.memory_space<vmem>>, vector<1x32xf32>
    %c0_13 = arith.constant 0 : index
    %c64 = arith.constant 64 : index
    %28 = vector.load %arg5[%c0_13, %c64] : memref<40x128xf32, #tpu.memory_space<vmem>>, vector<1x32xf32>
    %c0_14 = arith.constant 0 : index
    %c96 = arith.constant 96 : index
    %29 = vector.load %arg5[%c0_14, %c96] : memref<40x128xf32, #tpu.memory_space<vmem>>, vector<1x32xf32>
    %c2 = arith.constant 2 : index
    %c0_15 = arith.constant 0 : index
    %30 = vector.load %arg5[%c2, %c0_15] : memref<40x128xf32, #tpu.memory_space<vmem>>, vector<1x96xf32>
    %c2_16 = arith.constant 2 : index
    %c96_17 = arith.constant 96 : index
    %31 = vector.load %arg5[%c2_16, %c96_17] : memref<40x128xf32, #tpu.memory_space<vmem>>, vector<1x32xf32>
    %c4 = arith.constant 4 : index
    %c0_18 = arith.constant 0 : index
    %32 = vector.load %arg5[%c4, %c0_18] : memref<40x128xf32, #tpu.memory_space<vmem>>, vector<1x64xf32>
    %c4_19 = arith.constant 4 : index
    %c64_20 = arith.constant 64 : index
    %33 = vector.load %arg5[%c4_19, %c64_20] : memref<40x128xf32, #tpu.memory_space<vmem>>, vector<1x32xf32>
    %cst_21 = arith.constant dense<0.000000e+00> : vector<16xf32>
    %34 = vector.multi_reduction <add>, %8, %cst_21 [1] : vector<16x32xf32> to vector<16xf32>
    %35 = vector.shape_cast %34 : vector<16xf32> to vector<16x1xf32>
    %cst_22 = arith.constant 3.200000e+01 : f32
    %36 = vector.broadcast %cst_22 : f32 to vector<16x1xf32>
    %37 = arith.divf %35, %36 : vector<16x1xf32>
    %38 = vector.broadcast %37 : vector<16x1xf32> to vector<16x32xf32>
    %39 = arith.subf %8, %38 : vector<16x32xf32>
    %40 = arith.mulf %39, %39 : vector<16x32xf32>
    %cst_23 = arith.constant dense<0.000000e+00> : vector<16xf32>
    %41 = vector.multi_reduction <add>, %40, %cst_23 [1] : vector<16x32xf32> to vector<16xf32>
    %42 = vector.shape_cast %41 : vector<16xf32> to vector<16x1xf32>
    %cst_24 = arith.constant 3.200000e+01 : f32
    %43 = vector.broadcast %cst_24 : f32 to vector<16x1xf32>
    %44 = arith.divf %42, %43 : vector<16x1xf32>
    %45 = vector.broadcast %37 : vector<16x1xf32> to vector<16x32xf32>
    %46 = arith.subf %8, %45 : vector<16x32xf32>
    %cst_25 = arith.constant 9.99999974E-6 : f32
    %47 = vector.broadcast %cst_25 : f32 to vector<16x1xf32>
    %48 = arith.addf %44, %47 : vector<16x1xf32>
    %49 = math.rsqrt %48 : vector<16x1xf32>
    %50 = vector.broadcast %49 : vector<16x1xf32> to vector<16x32xf32>
    %51 = arith.mulf %46, %50 : vector<16x32xf32>
    %52 = vector.broadcast %26 : vector<1x32xf32> to vector<16x32xf32>
    %53 = arith.mulf %51, %52 : vector<16x32xf32>
    %54 = vector.broadcast %27 : vector<1x32xf32> to vector<16x32xf32>
    %55 = arith.addf %53, %54 : vector<16x32xf32>
    %56 = arith.truncf %55 : vector<16x32xf32> to vector<16x32xbf16>
    %c0_26 = arith.constant 0 : index
    %c0_27 = arith.constant 0 : index
    %c0_28 = arith.constant 0 : index
    %57 = vector.load %arg3[%c0_26, %c0_27, %c0_28] : memref<2x32x128xbf16, #tpu.memory_space<vmem>>, vector<1x32x96xbf16>
    %58 = vector.shape_cast %57 : vector<1x32x96xbf16> to vector<32x96xbf16>
    %cst_29 = arith.constant dense<0.000000e+00> : vector<16x96xf32>
    %59 = tpu.matmul %56, %58, %cst_29 {dimension_numbers = #tpu.dot_dimension_numbers<[1], [0], [0], [1], [0, 0, 1, 1], [], []>} : vector<16x32xbf16>, vector<32x96xbf16>, vector<16x96xf32> -> vector<16x96xf32>
    %60 = vector.broadcast %30 : vector<1x96xf32> to vector<16x96xf32>
    %61 = arith.addf %59, %60 : vector<16x96xf32>
    %cst_30 = arith.constant 0.000000e+00 : f32
    %62 = vector.broadcast %cst_30 : f32 to vector<16x32xf32>
    %63 = vector.extract_strided_slice %61 {offsets = [0, 0], sizes = [16, 16], strides = [1, 1]} : vector<16x96xf32> to vector<16x16xf32>
    %64 = vector.extract_strided_slice %61 {offsets = [0, 32], sizes = [16, 16], strides = [1, 1]} : vector<16x96xf32> to vector<16x16xf32>
    %65 = vector.extract_strided_slice %61 {offsets = [0, 64], sizes = [16, 16], strides = [1, 1]} : vector<16x96xf32> to vector<16x16xf32>
    %cst_31 = arith.constant dense<0.000000e+00> : vector<16x16xf32>
    %66 = tpu.matmul %63, %64, %cst_31 {dimension_numbers = #tpu.dot_dimension_numbers<[1], [1], [0], [0], [0, 0, 1, 0], [], []>} : vector<16x16xf32>, vector<16x16xf32>, vector<16x16xf32> -> vector<16x16xf32>
    %cst_32 = arith.constant 2.500000e-01 : f32
    %67 = vector.broadcast %cst_32 : f32 to vector<16x16xf32>
    %68 = arith.mulf %66, %67 : vector<16x16xf32>
    %69 = arith.addf %68, %25 : vector<16x16xf32>
    %cst_33 = arith.constant dense<0xFF800000> : vector<16xf32>
    %70 = vector.multi_reduction <maximumf>, %69, %cst_33 [1] : vector<16x16xf32> to vector<16xf32>
    %71 = vector.shape_cast %70 : vector<16xf32> to vector<16x1xf32>
    %72 = vector.broadcast %71 : vector<16x1xf32> to vector<16x16xf32>
    %73 = arith.subf %69, %72 : vector<16x16xf32>
    %74 = math.exp %73 : vector<16x16xf32>
    %cst_34 = arith.constant dense<0.000000e+00> : vector<16xf32>
    %75 = vector.multi_reduction <add>, %74, %cst_34 [1] : vector<16x16xf32> to vector<16xf32>
    %76 = vector.shape_cast %75 : vector<16xf32> to vector<16x1xf32>
    %77 = vector.broadcast %76 : vector<16x1xf32> to vector<16x16xf32>
    %78 = arith.divf %74, %77 : vector<16x16xf32>
    %cst_35 = arith.constant dense<0.000000e+00> : vector<16x16xf32>
    %79 = tpu.matmul %78, %65, %cst_35 {dimension_numbers = #tpu.dot_dimension_numbers<[1], [0], [0], [1], [0, 0, 1, 1], [], []>} : vector<16x16xf32>, vector<16x16xf32>, vector<16x16xf32> -> vector<16x16xf32>
    %80 = arith.truncf %79 : vector<16x16xf32> to vector<16x16xbf16>
    %c0_36 = arith.constant 0 : index
    %c0_37 = arith.constant 0 : index
    %c96_38 = arith.constant 96 : index
    %81 = vector.load %arg3[%c0_36, %c0_37, %c96_38] : memref<2x32x128xbf16, #tpu.memory_space<vmem>>, vector<1x16x32xbf16>
    %82 = vector.shape_cast %81 : vector<1x16x32xbf16> to vector<16x32xbf16>
    %cst_39 = arith.constant dense<0.000000e+00> : vector<16x32xf32>
    %83 = tpu.matmul %80, %82, %cst_39 {dimension_numbers = #tpu.dot_dimension_numbers<[1], [0], [0], [1], [0, 0, 1, 1], [], []>} : vector<16x16xbf16>, vector<16x32xbf16>, vector<16x32xf32> -> vector<16x32xf32>
    %84 = arith.addf %62, %83 : vector<16x32xf32>
    %85 = vector.extract_strided_slice %61 {offsets = [0, 16], sizes = [16, 16], strides = [1, 1]} : vector<16x96xf32> to vector<16x16xf32>
    %86 = vector.extract_strided_slice %61 {offsets = [0, 48], sizes = [16, 16], strides = [1, 1]} : vector<16x96xf32> to vector<16x16xf32>
    %87 = vector.extract_strided_slice %61 {offsets = [0, 80], sizes = [16, 16], strides = [1, 1]} : vector<16x96xf32> to vector<16x16xf32>
    %cst_40 = arith.constant dense<0.000000e+00> : vector<16x16xf32>
    %88 = tpu.matmul %85, %86, %cst_40 {dimension_numbers = #tpu.dot_dimension_numbers<[1], [1], [0], [0], [0, 0, 1, 0], [], []>} : vector<16x16xf32>, vector<16x16xf32>, vector<16x16xf32> -> vector<16x16xf32>
    %cst_41 = arith.constant 2.500000e-01 : f32
    %89 = vector.broadcast %cst_41 : f32 to vector<16x16xf32>
    %90 = arith.mulf %88, %89 : vector<16x16xf32>
    %91 = arith.addf %90, %25 : vector<16x16xf32>
    %cst_42 = arith.constant dense<0xFF800000> : vector<16xf32>
    %92 = vector.multi_reduction <maximumf>, %91, %cst_42 [1] : vector<16x16xf32> to vector<16xf32>
    %93 = vector.shape_cast %92 : vector<16xf32> to vector<16x1xf32>
    %94 = vector.broadcast %93 : vector<16x1xf32> to vector<16x16xf32>
    %95 = arith.subf %91, %94 : vector<16x16xf32>
    %96 = math.exp %95 : vector<16x16xf32>
    %cst_43 = arith.constant dense<0.000000e+00> : vector<16xf32>
    %97 = vector.multi_reduction <add>, %96, %cst_43 [1] : vector<16x16xf32> to vector<16xf32>
    %98 = vector.shape_cast %97 : vector<16xf32> to vector<16x1xf32>
    %99 = vector.broadcast %98 : vector<16x1xf32> to vector<16x16xf32>
    %100 = arith.divf %96, %99 : vector<16x16xf32>
    %cst_44 = arith.constant dense<0.000000e+00> : vector<16x16xf32>
    %101 = tpu.matmul %100, %87, %cst_44 {dimension_numbers = #tpu.dot_dimension_numbers<[1], [0], [0], [1], [0, 0, 1, 1], [], []>} : vector<16x16xf32>, vector<16x16xf32>, vector<16x16xf32> -> vector<16x16xf32>
    %102 = arith.truncf %101 : vector<16x16xf32> to vector<16x16xbf16>
    %c0_45 = arith.constant 0 : index
    %c16 = arith.constant 16 : index
    %c96_46 = arith.constant 96 : index
    %103 = vector.load %arg3[%c0_45, %c16, %c96_46] : memref<2x32x128xbf16, #tpu.memory_space<vmem>>, vector<1x16x32xbf16>
    %104 = vector.shape_cast %103 : vector<1x16x32xbf16> to vector<16x32xbf16>
    %cst_47 = arith.constant dense<0.000000e+00> : vector<16x32xf32>
    %105 = tpu.matmul %102, %104, %cst_47 {dimension_numbers = #tpu.dot_dimension_numbers<[1], [0], [0], [1], [0, 0, 1, 1], [], []>} : vector<16x16xbf16>, vector<16x32xbf16>, vector<16x32xf32> -> vector<16x32xf32>
    %106 = arith.addf %84, %105 : vector<16x32xf32>
    %107 = arith.addf %8, %106 : vector<16x32xf32>
    %108 = vector.broadcast %31 : vector<1x32xf32> to vector<16x32xf32>
    %109 = arith.addf %107, %108 : vector<16x32xf32>
    %cst_48 = arith.constant dense<0.000000e+00> : vector<16xf32>
    %110 = vector.multi_reduction <add>, %109, %cst_48 [1] : vector<16x32xf32> to vector<16xf32>
    %111 = vector.shape_cast %110 : vector<16xf32> to vector<16x1xf32>
    %cst_49 = arith.constant 3.200000e+01 : f32
    %112 = vector.broadcast %cst_49 : f32 to vector<16x1xf32>
    %113 = arith.divf %111, %112 : vector<16x1xf32>
    %114 = vector.broadcast %113 : vector<16x1xf32> to vector<16x32xf32>
    %115 = arith.subf %109, %114 : vector<16x32xf32>
    %116 = arith.mulf %115, %115 : vector<16x32xf32>
    %cst_50 = arith.constant dense<0.000000e+00> : vector<16xf32>
    %117 = vector.multi_reduction <add>, %116, %cst_50 [1] : vector<16x32xf32> to vector<16xf32>
    %118 = vector.shape_cast %117 : vector<16xf32> to vector<16x1xf32>
    %cst_51 = arith.constant 3.200000e+01 : f32
    %119 = vector.broadcast %cst_51 : f32 to vector<16x1xf32>
    %120 = arith.divf %118, %119 : vector<16x1xf32>
    %121 = vector.broadcast %113 : vector<16x1xf32> to vector<16x32xf32>
    %122 = arith.subf %109, %121 : vector<16x32xf32>
    %cst_52 = arith.constant 9.99999974E-6 : f32
    %123 = vector.broadcast %cst_52 : f32 to vector<16x1xf32>
    %124 = arith.addf %120, %123 : vector<16x1xf32>
    %125 = math.rsqrt %124 : vector<16x1xf32>
    %126 = vector.broadcast %125 : vector<16x1xf32> to vector<16x32xf32>
    %127 = arith.mulf %122, %126 : vector<16x32xf32>
    %128 = vector.broadcast %28 : vector<1x32xf32> to vector<16x32xf32>
    %129 = arith.mulf %127, %128 : vector<16x32xf32>
    %130 = vector.broadcast %29 : vector<1x32xf32> to vector<16x32xf32>
    %131 = arith.addf %129, %130 : vector<16x32xf32>
    %132 = arith.truncf %131 : vector<16x32xf32> to vector<16x32xbf16>
    %c0_53 = arith.constant 0 : index
    %c0_54 = arith.constant 0 : index
    %c0_55 = arith.constant 0 : index
    %133 = vector.load %arg4[%c0_53, %c0_54, %c0_55] : memref<2x96x64xbf16, #tpu.memory_space<vmem>>, vector<1x32x64xbf16>
    %134 = vector.shape_cast %133 : vector<1x32x64xbf16> to vector<32x64xbf16>
    %cst_56 = arith.constant dense<0.000000e+00> : vector<16x64xf32>
    %135 = tpu.matmul %132, %134, %cst_56 {dimension_numbers = #tpu.dot_dimension_numbers<[1], [0], [0], [1], [0, 0, 1, 1], [], []>} : vector<16x32xbf16>, vector<32x64xbf16>, vector<16x64xf32> -> vector<16x64xf32>
    %136 = vector.broadcast %32 : vector<1x64xf32> to vector<16x64xf32>
    %137 = arith.addf %135, %136 : vector<16x64xf32>
    %138 = arith.mulf %137, %137 : vector<16x64xf32>
    %139 = arith.mulf %137, %138 : vector<16x64xf32>
    %cst_57 = arith.constant 4.471500e-02 : f32
    %140 = vector.broadcast %cst_57 : f32 to vector<16x64xf32>
    %141 = arith.mulf %140, %139 : vector<16x64xf32>
    %142 = arith.addf %137, %141 : vector<16x64xf32>
    %cst_58 = arith.constant 0.797884583 : f32
    %143 = vector.broadcast %cst_58 : f32 to vector<16x64xf32>
    %144 = arith.mulf %143, %142 : vector<16x64xf32>
    %145 = math.tanh %144 : vector<16x64xf32>
    %cst_59 = arith.constant 1.000000e+00 : f32
    %146 = vector.broadcast %cst_59 : f32 to vector<16x64xf32>
    %147 = arith.addf %146, %145 : vector<16x64xf32>
    %cst_60 = arith.constant 5.000000e-01 : f32
    %148 = vector.broadcast %cst_60 : f32 to vector<16x64xf32>
    %149 = arith.mulf %148, %147 : vector<16x64xf32>
    %150 = arith.mulf %137, %149 : vector<16x64xf32>
    %151 = arith.truncf %150 : vector<16x64xf32> to vector<16x64xbf16>
    %c0_61 = arith.constant 0 : index
    %c32_62 = arith.constant 32 : index
    %c0_63 = arith.constant 0 : index
    %152 = vector.load %arg4[%c0_61, %c32_62, %c0_63] : memref<2x96x64xbf16, #tpu.memory_space<vmem>>, vector<1x64x32xbf16>
    %153 = vector.shape_cast %152 : vector<1x64x32xbf16> to vector<64x32xbf16>
    %cst_64 = arith.constant dense<0.000000e+00> : vector<16x32xf32>
    %154 = tpu.matmul %151, %153, %cst_64 {dimension_numbers = #tpu.dot_dimension_numbers<[1], [0], [0], [1], [0, 0, 1, 1], [], []>} : vector<16x64xbf16>, vector<64x32xbf16>, vector<16x32xf32> -> vector<16x32xf32>
    %155 = arith.addf %109, %154 : vector<16x32xf32>
    %156 = vector.broadcast %33 : vector<1x32xf32> to vector<16x32xf32>
    %157 = arith.addf %155, %156 : vector<16x32xf32>
    %c1 = arith.constant 1 : index
    %c0_65 = arith.constant 0 : index
    %158 = vector.load %arg5[%c1, %c0_65] : memref<40x128xf32, #tpu.memory_space<vmem>>, vector<1x32xf32>
    %c1_66 = arith.constant 1 : index
    %c32_67 = arith.constant 32 : index
    %159 = vector.load %arg5[%c1_66, %c32_67] : memref<40x128xf32, #tpu.memory_space<vmem>>, vector<1x32xf32>
    %c1_68 = arith.constant 1 : index
    %c64_69 = arith.constant 64 : index
    %160 = vector.load %arg5[%c1_68, %c64_69] : memref<40x128xf32, #tpu.memory_space<vmem>>, vector<1x32xf32>
    %c1_70 = arith.constant 1 : index
    %c96_71 = arith.constant 96 : index
    %161 = vector.load %arg5[%c1_70, %c96_71] : memref<40x128xf32, #tpu.memory_space<vmem>>, vector<1x32xf32>
    %c3 = arith.constant 3 : index
    %c0_72 = arith.constant 0 : index
    %162 = vector.load %arg5[%c3, %c0_72] : memref<40x128xf32, #tpu.memory_space<vmem>>, vector<1x96xf32>
    %c3_73 = arith.constant 3 : index
    %c96_74 = arith.constant 96 : index
    %163 = vector.load %arg5[%c3_73, %c96_74] : memref<40x128xf32, #tpu.memory_space<vmem>>, vector<1x32xf32>
    %c5 = arith.constant 5 : index
    %c0_75 = arith.constant 0 : index
    %164 = vector.load %arg5[%c5, %c0_75] : memref<40x128xf32, #tpu.memory_space<vmem>>, vector<1x64xf32>
    %c5_76 = arith.constant 5 : index
    %c64_77 = arith.constant 64 : index
    %165 = vector.load %arg5[%c5_76, %c64_77] : memref<40x128xf32, #tpu.memory_space<vmem>>, vector<1x32xf32>
    %cst_78 = arith.constant dense<0.000000e+00> : vector<16xf32>
    %166 = vector.multi_reduction <add>, %157, %cst_78 [1] : vector<16x32xf32> to vector<16xf32>
    %167 = vector.shape_cast %166 : vector<16xf32> to vector<16x1xf32>
    %cst_79 = arith.constant 3.200000e+01 : f32
    %168 = vector.broadcast %cst_79 : f32 to vector<16x1xf32>
    %169 = arith.divf %167, %168 : vector<16x1xf32>
    %170 = vector.broadcast %169 : vector<16x1xf32> to vector<16x32xf32>
    %171 = arith.subf %157, %170 : vector<16x32xf32>
    %172 = arith.mulf %171, %171 : vector<16x32xf32>
    %cst_80 = arith.constant dense<0.000000e+00> : vector<16xf32>
    %173 = vector.multi_reduction <add>, %172, %cst_80 [1] : vector<16x32xf32> to vector<16xf32>
    %174 = vector.shape_cast %173 : vector<16xf32> to vector<16x1xf32>
    %cst_81 = arith.constant 3.200000e+01 : f32
    %175 = vector.broadcast %cst_81 : f32 to vector<16x1xf32>
    %176 = arith.divf %174, %175 : vector<16x1xf32>
    %177 = vector.broadcast %169 : vector<16x1xf32> to vector<16x32xf32>
    %178 = arith.subf %157, %177 : vector<16x32xf32>
    %cst_82 = arith.constant 9.99999974E-6 : f32
    %179 = vector.broadcast %cst_82 : f32 to vector<16x1xf32>
    %180 = arith.addf %176, %179 : vector<16x1xf32>
    %181 = math.rsqrt %180 : vector<16x1xf32>
    %182 = vector.broadcast %181 : vector<16x1xf32> to vector<16x32xf32>
    %183 = arith.mulf %178, %182 : vector<16x32xf32>
    %184 = vector.broadcast %158 : vector<1x32xf32> to vector<16x32xf32>
    %185 = arith.mulf %183, %184 : vector<16x32xf32>
    %186 = vector.broadcast %159 : vector<1x32xf32> to vector<16x32xf32>
    %187 = arith.addf %185, %186 : vector<16x32xf32>
    %188 = arith.truncf %187 : vector<16x32xf32> to vector<16x32xbf16>
    %c1_83 = arith.constant 1 : index
    %c0_84 = arith.constant 0 : index
    %c0_85 = arith.constant 0 : index
    %189 = vector.load %arg3[%c1_83, %c0_84, %c0_85] : memref<2x32x128xbf16, #tpu.memory_space<vmem>>, vector<1x32x96xbf16>
    %190 = vector.shape_cast %189 : vector<1x32x96xbf16> to vector<32x96xbf16>
    %cst_86 = arith.constant dense<0.000000e+00> : vector<16x96xf32>
    %191 = tpu.matmul %188, %190, %cst_86 {dimension_numbers = #tpu.dot_dimension_numbers<[1], [0], [0], [1], [0, 0, 1, 1], [], []>} : vector<16x32xbf16>, vector<32x96xbf16>, vector<16x96xf32> -> vector<16x96xf32>
    %192 = vector.broadcast %162 : vector<1x96xf32> to vector<16x96xf32>
    %193 = arith.addf %191, %192 : vector<16x96xf32>
    %cst_87 = arith.constant 0.000000e+00 : f32
    %194 = vector.broadcast %cst_87 : f32 to vector<16x32xf32>
    %195 = vector.extract_strided_slice %193 {offsets = [0, 0], sizes = [16, 16], strides = [1, 1]} : vector<16x96xf32> to vector<16x16xf32>
    %196 = vector.extract_strided_slice %193 {offsets = [0, 32], sizes = [16, 16], strides = [1, 1]} : vector<16x96xf32> to vector<16x16xf32>
    %197 = vector.extract_strided_slice %193 {offsets = [0, 64], sizes = [16, 16], strides = [1, 1]} : vector<16x96xf32> to vector<16x16xf32>
    %cst_88 = arith.constant dense<0.000000e+00> : vector<16x16xf32>
    %198 = tpu.matmul %195, %196, %cst_88 {dimension_numbers = #tpu.dot_dimension_numbers<[1], [1], [0], [0], [0, 0, 1, 0], [], []>} : vector<16x16xf32>, vector<16x16xf32>, vector<16x16xf32> -> vector<16x16xf32>
    %cst_89 = arith.constant 2.500000e-01 : f32
    %199 = vector.broadcast %cst_89 : f32 to vector<16x16xf32>
    %200 = arith.mulf %198, %199 : vector<16x16xf32>
    %201 = arith.addf %200, %25 : vector<16x16xf32>
    %cst_90 = arith.constant dense<0xFF800000> : vector<16xf32>
    %202 = vector.multi_reduction <maximumf>, %201, %cst_90 [1] : vector<16x16xf32> to vector<16xf32>
    %203 = vector.shape_cast %202 : vector<16xf32> to vector<16x1xf32>
    %204 = vector.broadcast %203 : vector<16x1xf32> to vector<16x16xf32>
    %205 = arith.subf %201, %204 : vector<16x16xf32>
    %206 = math.exp %205 : vector<16x16xf32>
    %cst_91 = arith.constant dense<0.000000e+00> : vector<16xf32>
    %207 = vector.multi_reduction <add>, %206, %cst_91 [1] : vector<16x16xf32> to vector<16xf32>
    %208 = vector.shape_cast %207 : vector<16xf32> to vector<16x1xf32>
    %209 = vector.broadcast %208 : vector<16x1xf32> to vector<16x16xf32>
    %210 = arith.divf %206, %209 : vector<16x16xf32>
    %cst_92 = arith.constant dense<0.000000e+00> : vector<16x16xf32>
    %211 = tpu.matmul %210, %197, %cst_92 {dimension_numbers = #tpu.dot_dimension_numbers<[1], [0], [0], [1], [0, 0, 1, 1], [], []>} : vector<16x16xf32>, vector<16x16xf32>, vector<16x16xf32> -> vector<16x16xf32>
    %212 = arith.truncf %211 : vector<16x16xf32> to vector<16x16xbf16>
    %c1_93 = arith.constant 1 : index
    %c0_94 = arith.constant 0 : index
    %c96_95 = arith.constant 96 : index
    %213 = vector.load %arg3[%c1_93, %c0_94, %c96_95] : memref<2x32x128xbf16, #tpu.memory_space<vmem>>, vector<1x16x32xbf16>
    %214 = vector.shape_cast %213 : vector<1x16x32xbf16> to vector<16x32xbf16>
    %cst_96 = arith.constant dense<0.000000e+00> : vector<16x32xf32>
    %215 = tpu.matmul %212, %214, %cst_96 {dimension_numbers = #tpu.dot_dimension_numbers<[1], [0], [0], [1], [0, 0, 1, 1], [], []>} : vector<16x16xbf16>, vector<16x32xbf16>, vector<16x32xf32> -> vector<16x32xf32>
    %216 = arith.addf %194, %215 : vector<16x32xf32>
    %217 = vector.extract_strided_slice %193 {offsets = [0, 16], sizes = [16, 16], strides = [1, 1]} : vector<16x96xf32> to vector<16x16xf32>
    %218 = vector.extract_strided_slice %193 {offsets = [0, 48], sizes = [16, 16], strides = [1, 1]} : vector<16x96xf32> to vector<16x16xf32>
    %219 = vector.extract_strided_slice %193 {offsets = [0, 80], sizes = [16, 16], strides = [1, 1]} : vector<16x96xf32> to vector<16x16xf32>
    %cst_97 = arith.constant dense<0.000000e+00> : vector<16x16xf32>
    %220 = tpu.matmul %217, %218, %cst_97 {dimension_numbers = #tpu.dot_dimension_numbers<[1], [1], [0], [0], [0, 0, 1, 0], [], []>} : vector<16x16xf32>, vector<16x16xf32>, vector<16x16xf32> -> vector<16x16xf32>
    %cst_98 = arith.constant 2.500000e-01 : f32
    %221 = vector.broadcast %cst_98 : f32 to vector<16x16xf32>
    %222 = arith.mulf %220, %221 : vector<16x16xf32>
    %223 = arith.addf %222, %25 : vector<16x16xf32>
    %cst_99 = arith.constant dense<0xFF800000> : vector<16xf32>
    %224 = vector.multi_reduction <maximumf>, %223, %cst_99 [1] : vector<16x16xf32> to vector<16xf32>
    %225 = vector.shape_cast %224 : vector<16xf32> to vector<16x1xf32>
    %226 = vector.broadcast %225 : vector<16x1xf32> to vector<16x16xf32>
    %227 = arith.subf %223, %226 : vector<16x16xf32>
    %228 = math.exp %227 : vector<16x16xf32>
    %cst_100 = arith.constant dense<0.000000e+00> : vector<16xf32>
    %229 = vector.multi_reduction <add>, %228, %cst_100 [1] : vector<16x16xf32> to vector<16xf32>
    %230 = vector.shape_cast %229 : vector<16xf32> to vector<16x1xf32>
    %231 = vector.broadcast %230 : vector<16x1xf32> to vector<16x16xf32>
    %232 = arith.divf %228, %231 : vector<16x16xf32>
    %cst_101 = arith.constant dense<0.000000e+00> : vector<16x16xf32>
    %233 = tpu.matmul %232, %219, %cst_101 {dimension_numbers = #tpu.dot_dimension_numbers<[1], [0], [0], [1], [0, 0, 1, 1], [], []>} : vector<16x16xf32>, vector<16x16xf32>, vector<16x16xf32> -> vector<16x16xf32>
    %234 = arith.truncf %233 : vector<16x16xf32> to vector<16x16xbf16>
    %c1_102 = arith.constant 1 : index
    %c16_103 = arith.constant 16 : index
    %c96_104 = arith.constant 96 : index
    %235 = vector.load %arg3[%c1_102, %c16_103, %c96_104] : memref<2x32x128xbf16, #tpu.memory_space<vmem>>, vector<1x16x32xbf16>
    %236 = vector.shape_cast %235 : vector<1x16x32xbf16> to vector<16x32xbf16>
    %cst_105 = arith.constant dense<0.000000e+00> : vector<16x32xf32>
    %237 = tpu.matmul %234, %236, %cst_105 {dimension_numbers = #tpu.dot_dimension_numbers<[1], [0], [0], [1], [0, 0, 1, 1], [], []>} : vector<16x16xbf16>, vector<16x32xbf16>, vector<16x32xf32> -> vector<16x32xf32>
    %238 = arith.addf %216, %237 : vector<16x32xf32>
    %239 = arith.addf %157, %238 : vector<16x32xf32>
    %240 = vector.broadcast %163 : vector<1x32xf32> to vector<16x32xf32>
    %241 = arith.addf %239, %240 : vector<16x32xf32>
    %cst_106 = arith.constant dense<0.000000e+00> : vector<16xf32>
    %242 = vector.multi_reduction <add>, %241, %cst_106 [1] : vector<16x32xf32> to vector<16xf32>
    %243 = vector.shape_cast %242 : vector<16xf32> to vector<16x1xf32>
    %cst_107 = arith.constant 3.200000e+01 : f32
    %244 = vector.broadcast %cst_107 : f32 to vector<16x1xf32>
    %245 = arith.divf %243, %244 : vector<16x1xf32>
    %246 = vector.broadcast %245 : vector<16x1xf32> to vector<16x32xf32>
    %247 = arith.subf %241, %246 : vector<16x32xf32>
    %248 = arith.mulf %247, %247 : vector<16x32xf32>
    %cst_108 = arith.constant dense<0.000000e+00> : vector<16xf32>
    %249 = vector.multi_reduction <add>, %248, %cst_108 [1] : vector<16x32xf32> to vector<16xf32>
    %250 = vector.shape_cast %249 : vector<16xf32> to vector<16x1xf32>
    %cst_109 = arith.constant 3.200000e+01 : f32
    %251 = vector.broadcast %cst_109 : f32 to vector<16x1xf32>
    %252 = arith.divf %250, %251 : vector<16x1xf32>
    %253 = vector.broadcast %245 : vector<16x1xf32> to vector<16x32xf32>
    %254 = arith.subf %241, %253 : vector<16x32xf32>
    %cst_110 = arith.constant 9.99999974E-6 : f32
    %255 = vector.broadcast %cst_110 : f32 to vector<16x1xf32>
    %256 = arith.addf %252, %255 : vector<16x1xf32>
    %257 = math.rsqrt %256 : vector<16x1xf32>
    %258 = vector.broadcast %257 : vector<16x1xf32> to vector<16x32xf32>
    %259 = arith.mulf %254, %258 : vector<16x32xf32>
    %260 = vector.broadcast %160 : vector<1x32xf32> to vector<16x32xf32>
    %261 = arith.mulf %259, %260 : vector<16x32xf32>
    %262 = vector.broadcast %161 : vector<1x32xf32> to vector<16x32xf32>
    %263 = arith.addf %261, %262 : vector<16x32xf32>
    %264 = arith.truncf %263 : vector<16x32xf32> to vector<16x32xbf16>
    %c1_111 = arith.constant 1 : index
    %c0_112 = arith.constant 0 : index
    %c0_113 = arith.constant 0 : index
    %265 = vector.load %arg4[%c1_111, %c0_112, %c0_113] : memref<2x96x64xbf16, #tpu.memory_space<vmem>>, vector<1x32x64xbf16>
    %266 = vector.shape_cast %265 : vector<1x32x64xbf16> to vector<32x64xbf16>
    %cst_114 = arith.constant dense<0.000000e+00> : vector<16x64xf32>
    %267 = tpu.matmul %264, %266, %cst_114 {dimension_numbers = #tpu.dot_dimension_numbers<[1], [0], [0], [1], [0, 0, 1, 1], [], []>} : vector<16x32xbf16>, vector<32x64xbf16>, vector<16x64xf32> -> vector<16x64xf32>
    %268 = vector.broadcast %164 : vector<1x64xf32> to vector<16x64xf32>
    %269 = arith.addf %267, %268 : vector<16x64xf32>
    %270 = arith.mulf %269, %269 : vector<16x64xf32>
    %271 = arith.mulf %269, %270 : vector<16x64xf32>
    %cst_115 = arith.constant 4.471500e-02 : f32
    %272 = vector.broadcast %cst_115 : f32 to vector<16x64xf32>
    %273 = arith.mulf %272, %271 : vector<16x64xf32>
    %274 = arith.addf %269, %273 : vector<16x64xf32>
    %cst_116 = arith.constant 0.797884583 : f32
    %275 = vector.broadcast %cst_116 : f32 to vector<16x64xf32>
    %276 = arith.mulf %275, %274 : vector<16x64xf32>
    %277 = math.tanh %276 : vector<16x64xf32>
    %cst_117 = arith.constant 1.000000e+00 : f32
    %278 = vector.broadcast %cst_117 : f32 to vector<16x64xf32>
    %279 = arith.addf %278, %277 : vector<16x64xf32>
    %cst_118 = arith.constant 5.000000e-01 : f32
    %280 = vector.broadcast %cst_118 : f32 to vector<16x64xf32>
    %281 = arith.mulf %280, %279 : vector<16x64xf32>
    %282 = arith.mulf %269, %281 : vector<16x64xf32>
    %283 = arith.truncf %282 : vector<16x64xf32> to vector<16x64xbf16>
    %c1_119 = arith.constant 1 : index
    %c32_120 = arith.constant 32 : index
    %c0_121 = arith.constant 0 : index
    %284 = vector.load %arg4[%c1_119, %c32_120, %c0_121] : memref<2x96x64xbf16, #tpu.memory_space<vmem>>, vector<1x64x32xbf16>
    %285 = vector.shape_cast %284 : vector<1x64x32xbf16> to vector<64x32xbf16>
    %cst_122 = arith.constant dense<0.000000e+00> : vector<16x32xf32>
    %286 = tpu.matmul %283, %285, %cst_122 {dimension_numbers = #tpu.dot_dimension_numbers<[1], [0], [0], [1], [0, 0, 1, 1], [], []>} : vector<16x64xbf16>, vector<64x32xbf16>, vector<16x32xf32> -> vector<16x32xf32>
    %287 = arith.addf %241, %286 : vector<16x32xf32>
    %288 = vector.broadcast %165 : vector<1x32xf32> to vector<16x32xf32>
    %289 = arith.addf %287, %288 : vector<16x32xf32>
    %c6 = arith.constant 6 : index
    %c0_123 = arith.constant 0 : index
    %290 = vector.load %arg5[%c6, %c0_123] : memref<40x128xf32, #tpu.memory_space<vmem>>, vector<1x32xf32>
    %c6_124 = arith.constant 6 : index
    %c32_125 = arith.constant 32 : index
    %291 = vector.load %arg5[%c6_124, %c32_125] : memref<40x128xf32, #tpu.memory_space<vmem>>, vector<1x32xf32>
    %cst_126 = arith.constant dense<0.000000e+00> : vector<16xf32>
    %292 = vector.multi_reduction <add>, %289, %cst_126 [1] : vector<16x32xf32> to vector<16xf32>
    %293 = vector.shape_cast %292 : vector<16xf32> to vector<16x1xf32>
    %cst_127 = arith.constant 3.200000e+01 : f32
    %294 = vector.broadcast %cst_127 : f32 to vector<16x1xf32>
    %295 = arith.divf %293, %294 : vector<16x1xf32>
    %296 = vector.broadcast %295 : vector<16x1xf32> to vector<16x32xf32>
    %297 = arith.subf %289, %296 : vector<16x32xf32>
    %298 = arith.mulf %297, %297 : vector<16x32xf32>
    %cst_128 = arith.constant dense<0.000000e+00> : vector<16xf32>
    %299 = vector.multi_reduction <add>, %298, %cst_128 [1] : vector<16x32xf32> to vector<16xf32>
    %300 = vector.shape_cast %299 : vector<16xf32> to vector<16x1xf32>
    %cst_129 = arith.constant 3.200000e+01 : f32
    %301 = vector.broadcast %cst_129 : f32 to vector<16x1xf32>
    %302 = arith.divf %300, %301 : vector<16x1xf32>
    %303 = vector.broadcast %295 : vector<16x1xf32> to vector<16x32xf32>
    %304 = arith.subf %289, %303 : vector<16x32xf32>
    %cst_130 = arith.constant 9.99999974E-6 : f32
    %305 = vector.broadcast %cst_130 : f32 to vector<16x1xf32>
    %306 = arith.addf %302, %305 : vector<16x1xf32>
    %307 = math.rsqrt %306 : vector<16x1xf32>
    %308 = vector.broadcast %307 : vector<16x1xf32> to vector<16x32xf32>
    %309 = arith.mulf %304, %308 : vector<16x32xf32>
    %310 = vector.broadcast %290 : vector<1x32xf32> to vector<16x32xf32>
    %311 = arith.mulf %309, %310 : vector<16x32xf32>
    %312 = vector.broadcast %291 : vector<1x32xf32> to vector<16x32xf32>
    %313 = arith.addf %311, %312 : vector<16x32xf32>
    %314 = vector.extract_strided_slice %313 {offsets = [7, 0], sizes = [1, 32], strides = [1, 1]} : vector<16x32xf32> to vector<1x32xf32>
    %315 = vector.extract_strided_slice %313 {offsets = [15, 0], sizes = [1, 32], strides = [1, 1]} : vector<16x32xf32> to vector<1x32xf32>
    %316 = tpu.concatenate %314, %315 in 0 : vector<1x32xf32>, vector<1x32xf32> -> vector<2x32xf32>
    %c7 = arith.constant 7 : index
    %c0_131 = arith.constant 0 : index
    %317 = vector.load %arg5[%c7, %c0_131] : memref<40x128xf32, #tpu.memory_space<vmem>>, vector<1x128xf32>
    %c8 = arith.constant 8 : index
    %c0_132 = arith.constant 0 : index
    %318 = vector.load %arg5[%c8, %c0_132] : memref<40x128xf32, #tpu.memory_space<vmem>>, vector<32x128xf32>
    %cst_133 = arith.constant dense<0.000000e+00> : vector<2x128xf32>
    %319 = tpu.matmul %316, %318, %cst_133 {dimension_numbers = #tpu.dot_dimension_numbers<[1], [0], [0], [1], [0, 0, 1, 1], [], []>} : vector<2x32xf32>, vector<32x128xf32>, vector<2x128xf32> -> vector<2x128xf32>
    %320 = vector.broadcast %317 : vector<1x128xf32> to vector<2x128xf32>
    %321 = arith.addf %319, %320 : vector<2x128xf32>
    %c0_134 = arith.constant 0 : index
    %c0_135 = arith.constant 0 : index
    %322 = vector.load %arg6[%c0_134, %c0_135] : memref<2x128xf32, #tpu.memory_space<vmem>>, vector<2x128xf32>
    tpu.vector_store %arg6[%c0_134, %c0_135], %321 {strides = array<i32>} : memref<2x128xf32, #tpu.memory_space<vmem>>, vector<2x128xf32>,
    return
  }
}

</mosaic_0001>

<bundles_post_ra>
// kernel: forward.1
= control target key start
LH: loop header
LB: loop body
LE: loop exit
PB: predicated region body
PF: predicated region fallthrough
CT: control target
= control target key end

     0   :  { %v25_v1 = vlaneseq  ;;  %v1616_v3 = vmov 0   ;;  %s2092_s0 = inlined_call_operand.vmem [shape: s32[16,1], index: 0, kind: input, shape index: {}]   ;;  %s2093_s1 = inlined_call_operand.vmem [shape: s32[1,16], index: 1, kind: input, shape index: {}]   ;;  %s2094_s2 = inlined_call_operand.vmem [shape: f32[64,32], index: 2, kind: input, shape index: {}]   ;;  %s2095_s3 = inlined_call_operand.vmem [shape: bf16[2,32,128], index: 3, kind: input, shape index: {}]   ;;  %s2096_s4 = inlined_call_operand.vmem [shape: bf16[2,96,64], index: 4, kind: input, shape index: {}]   ;;  %s2097_s5 = inlined_call_operand.vmem [shape: f32[40,128], index: 5, kind: input, shape index: {}]   ;;  %s2098_s6 = inlined_call_operand.hbm [shape: f32[2,128], index: 6, kind: output, shape index: {}]  }
   0x1   :  { %v87_v0 = vld [vmem:[%s2093_s1] sm:$0x1]  ;;  %1499 = vset.pattern.permute.xlu0 %v1616_v3  ;;  %v46_v4 = vld [vmem:[%s2094_s2 + $0x38] sm:$0xff]  ;;  %v45_v5 = vld [vmem:[%s2094_s2 + $0x30] sm:$0xff] }
   0x2   :  { %v27_v2 = vld [vmem:[%s2092_s0] sm:$0xff]  ;;  %vm88_vm0 = vcmp.gt.s32.totalorder %v87_v0, 0  ;;  %v26_v6 = vand.u32 127, %v25_v1  ;;  %v78_v7 = vshrl.u32 %v25_v1, 7  ;;  %62 = vmatpush.msra.mxu0 %v46_v4  ;;  %v44_v10 = vld [vmem:[%s2094_s2 + $0x28] sm:$0xff]  ;;  %v42_v18 = vld [vmem:[%s2094_s2 + $0x18] sm:$0xff] }
   0x3   :  { %v91_v8 = vsel %vm88_vm0, 1, %v1616_v3  ;;  %30 = vperm.xlu0 %1499, %v27_v2   ;;  %v28_v15 = vld [vmem:[%s2092_s0 + $0x8] sm:$0xff]  ;;  %v43_v16 = vld [vmem:[%s2094_s2 + $0x20] sm:$0xff]  ;;  %v41_v21 = vld [vmem:[%s2094_s2 + $0x10] sm:$0xff] }
   0x4   :  { %v92_v9 = vperm.slane %v91_v8, 0  ;;  %v79_v11 = vadd.s32 8, %v78_v7  ;;  %v80_v12 = vshra.s32 %v78_v7, 3  ;;  %v82_v13 = vshra.s32 %v26_v6, 3  ;;  %63 = vmatpush.msra.mxu0 %v45_v5  ;;  %v40_v22 = vld [vmem:[%s2094_s2 + $0x8] sm:$0xff] }
   0x5   :  { %vm85_vm1 = vcmp.ge.s32.totalorder %v78_v7, %v26_v6 }
   0x6   :  { %vm1677_vm2 = vcmp.eq.s32.totalorder %v92_v9, 1  ;;  %v81_v17 = vshra.s32 %v79_v11, 3  ;;  %vm83_vm3 = vcmp.eq.s32.totalorder %v80_v12, %v82_v13  ;;  %vm86_vm4 = vcmp.ge.s32.totalorder %v79_v11, %v26_v6  ;;  %64 = vmatpush.msra.mxu0 %v44_v10 }
   0x7   :  { %vm1690_vm5 = vmand %vm83_vm3, %vm85_vm1 }
   0x8   :  { %vm84_vm6 = vcmp.eq.s32.totalorder %v81_v17, %v82_v13  ;;  %vm94_vm7 = vmand %vm1690_vm5, %vm1677_vm2  ;;  %65 = vmatpush.msra.mxu0 %v43_v16 }
   0x9   :  { %vm1698_vm8 = vmand %vm84_vm6, %vm86_vm4 }
   0xa   :  { %vm95_vm9 = vmand %vm1698_vm8, %vm1677_vm2  ;;  %66 = vmatpush.msra.mxu0 %v42_v18 }
   0xb   :  { %33 = vperm.xlu0 %1499, %v28_v15  }
   0xc   :  { %11 = vsyncpa [#allocation3], 0  ;;  %67 = vmatpush.msra.mxu0 %v41_v21  ;;  %v39_v23 = vld [vmem:[%s2094_s2] sm:$0xff]  ;;  %vm47_vm10 = vcmask 523264   ;;  %v1617_v25 = vmov 0.0   ;;  %vm101_vm13 = vcmask 261120  }
   0xd   :  { %v1618_v33 = vmov 32.0   ;;  %v1728_v36 = vld [vmem:[%s2097_s5] ss:$0 sm:$0xff]  ;;  %s1619_s18 = smov 96   ;;  %v1743_v51 = vld [vmem:[%s2095_s3 + $0x8] sm:$0xff]  ;;  %s1621_s25 = smov 64  }
   0xe   :  { %68 = vmatpush.msra.mxu0 %v40_v22  ;;  %1528 = vrcp.f32 %v1618_v33  ;;  %189 = vmatpush.bf16.msra.mxu1 %v1743_v51  ;;  %v1470_v54 = vld [vmem:[%s2095_s3] sm:$0xff]  ;;  %s1622_s26 = smov 112   ;;  %s1623_s27 = smov 80  }
   0xf   :  { %v1757_v18 = vld [vmem:[%s2097_s5 + $0x2] ss:$0 sm:$0xff]  ;;  %s1624_s28 = smov 48   ;;  %s1625_s1 = smov 32  }
  0x10   :  { %69 = vmatpush.msra.mxu0 %v39_v23  ;;  %s1626_s7 = smov [#allocation2]  }
  0x12   :  { %190 = vmatpush.bf16.msra.mxu1 %v1470_v54 }
  0x13   :  { %157 = vrot.lane.b32.xlu0 %v1728_v36, %s1619_s18 }
  0x14   :  { %v1529_v34 = vpop.eup %1528 }
  0x15   :  { %v109_v35 = vmul.f32 32.0, %v1529_v34  ;;  %vm113_vm14 = vweird.f32 %v1529_v34 }
  0x17   :  { %v110_v37 = vsub.f32 1.0, %v109_v35 }
  0x19   :  { %v111_v38 = vmul.f32 %v1529_v34, %v110_v37 }
  0x1b   :  { %v112_v39 = vadd.f32 %v1529_v34, %v111_v38 }
  0x1d   :  { %v1732_v40 = vsel %vm113_vm14, %v1529_v34, %v112_v39 }
  0x75   :  { %v31_v24 = vpop.permute.xlu0 %30 }
  0x76   :  { %vm35_vm11 = vcmp.eq.s32.totalorder %v31_v24, %v26_v6 }
  0x77   :  { %v37_v26 = vsel %vm35_vm11, 1.0, %v1617_v25  ;;  %vm203_vm11 = vcmask 130048  }
  0x78   :  { %1343 = vmatmul.msk.f32.vlgmr.msra.gmra.mxu0 %vm47_vm10, %v37_v26 }
  0x7d   :  { %v34_v27 = vpop.permute.xlu0 %33 }
  0x7e   :  { %vm36_vm12 = vcmp.eq.s32.totalorder %v34_v27, %v26_v6  ;;  %v1620_v27 = vmov -1e+09  }
  0x7f   :  { %v38_v28 = vsel %vm36_vm12, 1.0, %v1617_v25  ;;  %v1781_v35 = vsel %vm95_vm9, 0.0, %v1620_v27 }
  0x80   :  { %1344 = vmatmul.msk.f32.gmra.mxu0 %vm47_vm10, %v38_v28  ;;  %v1772_v28 = vsel %vm94_vm7, 0.0, %v1620_v27 }
  0x85   :  { %v158_v12 = vpop.permute.xlu0 %157 }
  0xf5   :  { %v1717_v29 = vpop.f32.mrf.mxu0 }
  0xf6   :  { %v102_v30 = vsel %vm101_vm13, %v1717_v29, 0.0 }
  0xf7   :  { %103 = vadd.xlane.f32.xlu1 %v102_v30 }
  0xfd   :  { %v1721_v31 = vpop.f32.mrf.mxu0 }
  0xfe   :  { %v105_v32 = vsel %vm101_vm13, %v1721_v31, 0.0 }
  0xff   :  { %106 = vadd.xlane.f32.xlu1 %v105_v32 }
 0x16a   :  { %v104_v41 = vpop.xlane.xlu1 %103 }
 0x16b   :  { %v115_v42 = vmul.f32 %v1732_v40, %v104_v41 }
 0x16d   :  { %v117_v43 = vsub.f32 %v1717_v29, %v115_v42 }
 0x16f   :  { %v119_v44 = vmul.f32 %v117_v43, %v117_v43 }
 0x171   :  { %v121_v45 = vsel %vm101_vm13, %v119_v44, 0.0 }
 0x172   :  { %122 = vadd.xlane.f32.xlu2 %v121_v45  ;;  %v107_v46 = vpop.xlane.xlu1 %106 }
 0x173   :  { %v116_v47 = vmul.f32 %v1732_v40, %v107_v46 }
 0x175   :  { %v118_v48 = vsub.f32 %v1721_v31, %v116_v47 }
 0x177   :  { %v120_v49 = vmul.f32 %v118_v48, %v118_v48 }
 0x179   :  { %v124_v50 = vsel %vm101_vm13, %v120_v49, 0.0 }
 0x17a   :  { %125 = vadd.xlane.f32.xlu2 %v124_v50 }
 0x1e5   :  { %v123_v52 = vpop.xlane.xlu2 %122 }
 0x1e6   :  { %v127_v53 = vmul.f32 %v123_v52, %v1732_v40 }
 0x1e8   :  { %v129_v55 = vadd.f32 1e-05, %v127_v53 }
 0x1ea   :  { %1530 = vrsqrt.f32 %v129_v55  ;;  %vm137_vm0 = vweird.f32 %v129_v55 }
 0x1ed   :  { %v126_v56 = vpop.xlane.xlu2 %125 }
 0x1ee   :  { %v128_v57 = vmul.f32 %v126_v56, %v1732_v40 }
 0x1f0   :  { %v1531_v58 = vpop.eup %1530  ;;  %v130_v59 = vadd.f32 1e-05, %v128_v57 }
 0x1f1   :  { %v132_v60 = vmul.f32 %v1531_v58, %v129_v55  ;;  %vm138_vm15 = vweird.f32 %v1531_v58 }
 0x1f2   :  { %1532 = vrsqrt.f32 %v130_v59  ;;  %vm139_vm1 = vmor %vm137_vm0, %vm138_vm15  ;;  %vm147_vm4 = vweird.f32 %v130_v59 }
 0x1f3   :  { %v133_v61 = vmul.f32 %v1531_v58, %v132_v60 }
 0x1f5   :  { %v134_v62 = vmul.f32 0.5, %v133_v61 }
 0x1f7   :  { %v135_v63 = vsub.f32 1.5, %v134_v62 }
 0x1f8   :  { %v1533_v0 = vpop.eup %1532 }
 0x1f9   :  { %v136_v1 = vmul.f32 %v1531_v58, %v135_v63  ;;  %v142_v2 = vmul.f32 %v1533_v0, %v130_v59  ;;  %vm148_vm3 = vweird.f32 %v1533_v0 }
 0x1fa   :  { %vm149_vm6 = vmor %vm147_vm4, %vm148_vm3 }
 0x1fb   :  { %v143_v3 = vmul.f32 %v1533_v0, %v142_v2  ;;  %v140_v5 = vsel %vm139_vm1, %v1531_v58, %v136_v1 }
 0x1fc   :  { %v151_v7 = vmul.f32 %v140_v5, %v117_v43 }
 0x1fd   :  { %v144_v4 = vmul.f32 0.5, %v143_v3 }
 0x1fe   :  { %v154_v11 = vmul.f32 %v1728_v36, %v151_v7 }
 0x1ff   :  { %v145_v6 = vsub.f32 1.5, %v144_v4 }
 0x200   :  { %v160_v15 = vadd.f32 %v158_v12, %v154_v11 }
 0x201   :  { %v146_v8 = vmul.f32 %v1533_v0, %v145_v6 }
 0x203   :  { %v150_v9 = vsel %vm149_vm6, %v1533_v0, %v146_v8 }
 0x204   :  { %v152_v10 = vmul.f32 %v150_v9, %v118_v48 }
 0x206   :  { %v155_v13 = vmul.f32 %v1728_v36, %v152_v10 }
 0x208   :  { %v161_v16 = vadd.f32 %v158_v12, %v155_v13 }
 0x20a   :  { %v162_v17 = vpack.c.bf16 %v161_v16, %v160_v15 }
 0x20c   :  { %1353 = vmatmul.msk.bf16.vlgmr.msra.gmra.mxu1 %vm101_vm13, %v162_v17 }
 0x289   :  { %v192_v21 = vpop.f32.mrf.mxu1 }
 0x28a   :  { %v193_v22 = vadd.f32 %v1757_v18, %v192_v21 }
 0x28c   :  { %199 = vrot.lane.b32.xlu2 %v193_v22, %s1619_s18 }
 0x291   :  { %v194_v23 = vpop.f32.mrf.mxu1 }
 0x292   :  { %v195_v24 = vadd.f32 %v1757_v18, %v194_v23 }
 0x294   :  { %201 = vrot.lane.b32.xlu1 %v195_v24, %s1619_s18  ;;  %v1785_v41 = vpack.i.bf16 %v193_v22, %v195_v24 }
 0x2e6   :  { %v200_v26 = vpop.permute.xlu2 %199 }
 0x306   :  { %v202_v25 = vpop.permute.xlu1 %201 }
 0x307   :  { %1354 = vmatpush.xpose.msk.msra.mxu2 %vm203_vm11, %v202_v25 }
 0x30b   :  { %1355 = vmatpush.xpose.msk.msra.mxu2 %vm203_vm11, %v200_v26 }
 0x30e   :  { %1356 = vmatmul.msk.f32.vlgmr.msra.gmra.mxu2 %vm203_vm11, %v193_v22 }
 0x316   :  { %1357 = vmatmul.msk.f32.gmra.mxu2 %vm203_vm11, %v195_v24 }
 0x391   :  { %v229_v30 = vpop.f32.mrf.mxu2 }
 0x392   :  { %v235_v32 = vmul.f32 0.25, %v229_v30 }
 0x394   :  { %v237_v33 = vadd.f32 %v235_v32, %v1772_v28 }
 0x396   :  { %v239_v34 = vsel %vm203_vm11, %v237_v33, -inf }
 0x397   :  { %240 = vmax.xlane.f32.xlu0 %v239_v34 }
 0x399   :  { %v232_v19 = vpop.f32.mrf.mxu2 }
 0x39a   :  { %v236_v37 = vmul.f32 0.25, %v232_v19 }
 0x39c   :  { %v238_v38 = vadd.f32 %v236_v37, %v1781_v35 }
 0x39e   :  { %v242_v39 = vsel %vm203_vm11, %v238_v38, -inf }
 0x39f   :  { %243 = vmax.xlane.f32.xlu2 %v242_v39 }
 0x3ab   :  { %1501 = vrot.lane.b32.xlu0 %v1785_v41, %s1621_s25 }
 0x3b3   :  { %325 = vrot.lane.b32.xlu0 %v193_v22, %s1622_s26 }
 0x3b7   :  { %331 = vrot.lane.b32.xlu2 %v195_v24, %s1623_s27 }
 0x40a   :  { %v241_v14 = vpop.xlane.xlu0 %240 }
 0x40b   :  { %v245_v20 = vsub.f32 %v237_v33, %v241_v14 }
 0x40d   :  { %v247_v42 = vmul.f32 1.442695, %v245_v20 }
 0x40f   :  { %1534 = vpow2.f32 %v247_v42 }
 0x412   :  { %v244_v43 = vpop.xlane.xlu2 %243 }
 0x413   :  { %v246_v44 = vsub.f32 %v238_v38, %v244_v43 }
 0x415   :  { %v1535_v45 = vpop.eup %1534  ;;  %v249_v46 = vmul.f32 1.442695, %v246_v44 }
 0x416   :  { %v251_v47 = vsel %vm203_vm11, %v1535_v45, 0.0 }
 0x417   :  { %1536 = vpow2.f32 %v249_v46  ;;  %252 = vadd.xlane.f32.xlu1 %v251_v47 }
 0x41a   :  { %v332_v54 = vpop.permute.xlu2 %331 }
 0x41d   :  { %v1537_v48 = vpop.eup %1536  ;;  %v1502_v49 = vpop.permute.xlu0 %1501 }
 0x41e   :  { %v254_v50 = vsel %vm203_vm11, %v1537_v48, 0.0  ;;  %v1503_v52 = vunpack.i.l.bf16 %v1502_v49  ;;  %v1504_v53 = vunpack.i.h.bf16 %v1502_v49  ;;  %v1472_v49 = vld [vmem:[%s2095_s3] sm:$0xff] }
 0x41f   :  { %255 = vadd.xlane.f32.xlu0 %v254_v50 }
 0x420   :  { %313 = vmatpush.msra.mxu3 %v1503_v52 }
 0x422   :  { %314 = vmatpush.msra.mxu3 %v1504_v53 }
 0x424   :  { %1360 = vmatpush.xpose.msk.msrb.mxu3 %vm203_vm11, %v332_v54 }
 0x425   :  { %v326_v55 = vpop.permute.xlu0 %325 }
 0x430   :  { %329 = vrot.lane.b32.xlu1 %v193_v22, %s1623_s27 }
 0x433   :  { %327 = vrot.lane.b32.xlu0 %v195_v24, %s1622_s26 }
 0x48a   :  { %v253_v56 = vpop.xlane.xlu1 %252 }
 0x48b   :  { %1538 = vrcp.f32 %v253_v56  ;;  %v268_v61 = vand.u32 2147483648, %v253_v56  ;;  %v266_v63 = vand.u32 2147483647, %v253_v56  ;;  %vm262_vm5 = vweird.f32 %v253_v56 }
 0x48d   :  { %v269_v2 = vor.u32 1.1754944e-38, %v268_v61  ;;  %vm267_vm8 = vcmp.eq.f32.partialorder %v266_v63, 8.507059e+37 }
 0x491   :  { %v1539_v57 = vpop.eup %1538 }
 0x492   :  { %v258_v58 = vmul.f32 %v1539_v57, %v253_v56  ;;  %v256_v59 = vpop.xlane.xlu0 %255  ;;  %vm263_vm2 = vweird.f32 %v1539_v57 }
 0x493   :  { %1540 = vrcp.f32 %v256_v59  ;;  %vm264_vm7 = vmor %vm262_vm5, %vm263_vm2  ;;  %v283_v8 = vand.u32 2147483648, %v256_v59  ;;  %v281_v10 = vand.u32 2147483647, %v256_v59  ;;  %vm277_vm12 = vweird.f32 %v256_v59 }
 0x494   :  { %v259_v60 = vsub.f32 1.0, %v258_v58 }
 0x495   :  { %v284_v12 = vor.u32 1.1754944e-38, %v283_v8  ;;  %vm282_vm15 = vcmp.eq.f32.partialorder %v281_v10, 8.507059e+37 }
 0x496   :  { %v260_v62 = vmul.f32 %v1539_v57, %v259_v60 }
 0x498   :  { %v261_v0 = vadd.f32 %v1539_v57, %v260_v62 }
 0x499   :  { %v1541_v1 = vpop.eup %1540 }
 0x49a   :  { %v273_v3 = vmul.f32 %v1541_v1, %v256_v59  ;;  %v265_v4 = vsel %vm264_vm7, %v1539_v57, %v261_v0  ;;  %vm278_vm9 = vweird.f32 %v1541_v1 }
 0x49b   :  { %v270_v5 = vsel %vm267_vm8, %v269_v2, %v265_v4  ;;  %vm279_vm14 = vmor %vm277_vm12, %vm278_vm9 }
 0x49c   :  { %v274_v6 = vsub.f32 1.0, %v273_v3  ;;  %v271_v7 = vmul.f32 %v1535_v45, %v270_v5 }
 0x49e   :  { %v275_v9 = vmul.f32 %v1541_v1, %v274_v6  ;;  %1358 = vmatmul.msk.f32.vlgmr.msra.gmra.mxu3 %vm203_vm11, %v271_v7 }
 0x4a0   :  { %v276_v11 = vadd.f32 %v1541_v1, %v275_v9 }
 0x4a2   :  { %v330_v13 = vpop.permute.xlu1 %329  ;;  %v280_v15 = vsel %vm279_vm14, %v1541_v1, %v276_v11 }
 0x4a3   :  { %1361 = vmatpush.xpose.msk.msrb.mxu3 %vm203_vm11, %v330_v13  ;;  %v285_v16 = vsel %vm282_vm15, %v284_v12, %v280_v15 }
 0x4a4   :  { %v286_v17 = vmul.f32 %v1537_v48, %v285_v16 }
 0x4a5   :  { %v328_v21 = vpop.permute.xlu0 %327 }
 0x4a6   :  { %1359 = vmatmul.msk.f32.gmra.mxu3 %vm203_vm11, %v286_v17 }
 0x4ae   :  { %1362 = vmatmul.msk.f32.vlgmr.msrb.gmra.mxu3 %vm203_vm11, %v326_v55 }
 0x4b6   :  { %1363 = vmatmul.msk.f32.gmra.mxu3 %vm203_vm11, %v328_v21 }
 0x521   :  { %v1801_v22 = vpop.f32.mrf.mxu3 }
 0x529   :  { %v1803_v23 = vpop.f32.mrf.mxu3 }
 0x52a   :  { %v322_v24 = vpack.c.bf16 %v1803_v23, %v1801_v22 }
 0x531   :  { %v358_v25 = vpop.f32.mrf.mxu3 }
 0x532   :  { %v364_v26 = vmul.f32 0.25, %v358_v25 }
 0x534   :  { %v366_v27 = vadd.f32 %v364_v26, %v1772_v28 }
 0x536   :  { %v368_v30 = vsel %vm203_vm11, %v366_v27, -inf }
 0x537   :  { %369 = vmax.xlane.f32.xlu2 %v368_v30 }
 0x539   :  { %v361_v32 = vpop.f32.mrf.mxu3 }
 0x53a   :  { %v365_v33 = vmul.f32 0.25, %v361_v32 }
 0x53c   :  { %v367_v34 = vadd.f32 %v365_v33, %v1781_v35 }
 0x53e   :  { %v371_v19 = vsel %vm203_vm11, %v367_v34, -inf }
 0x53f   :  { %372 = vmax.xlane.f32.xlu1 %v371_v19 }
 0x558   :  { %1506 = vrot.lane.b32.xlu1 %v1785_v41, %s1624_s28 }
 0x5aa   :  { %v370_v37 = vpop.xlane.xlu2 %369 }
 0x5ab   :  { %v374_v38 = vsub.f32 %v366_v27, %v370_v37 }
 0x5ad   :  { %v376_v39 = vmul.f32 1.442695, %v374_v38 }
 0x5af   :  { %1542 = vpow2.f32 %v376_v39 }
 0x5b2   :  { %v373_v14 = vpop.xlane.xlu1 %372 }
 0x5b3   :  { %v375_v20 = vsub.f32 %v367_v34, %v373_v14 }
 0x5b5   :  { %v1543_v42 = vpop.eup %1542  ;;  %v378_v43 = vmul.f32 1.442695, %v375_v20 }
 0x5b6   :  { %v380_v44 = vsel %vm203_vm11, %v1543_v42, 0.0 }
 0x5b7   :  { %1544 = vpow2.f32 %v378_v43  ;;  %381 = vadd.xlane.f32.xlu0 %v380_v44  ;;  %v1474_v43 = vld [vmem:[%s2096_s4 + $0x8] sm:$0xff] }
 0x5b8   :  { %586 = vmatpush.bf16.msra.mxu3 %v1474_v43 }
 0x5bd   :  { %v1545_v45 = vpop.eup %1544 }
 0x5be   :  { %v383_v46 = vsel %vm203_vm11, %v1545_v45, 0.0 }
 0x5bf   :  { %384 = vadd.xlane.f32.xlu2 %v383_v46  ;;  %v1473_v46 = vld [vmem:[%s2096_s4] sm:$0xff] }
 0x5c0   :  { %587 = vmatpush.bf16.msra.mxu3 %v1473_v46 }
 0x5ca   :  { %v1507_v47 = vpop.permute.xlu1 %1506 }
 0x5cb   :  { %v1508_v48 = vunpack.i.l.bf16 %v1507_v47  ;;  %452 = vrot.lane.b32.xlu0 %v1743_v51, %s1625_s1  ;;  %v1509_v41 = vunpack.i.h.bf16 %v1507_v47 }
 0x5cd   :  { %442 = vmatpush.msrb.mxu1 %v1508_v48  ;;  %v1522_v48 = vld [vmem:[%s2097_s5 + $0x4] ss:$0 sm:$0xff] }
 0x5cf   :  { %443 = vmatpush.msrb.mxu1 %v1509_v41 }
 0x5d3   :  { %500 = vrot.lane.b32.xlu0 %v1757_v18, %s1625_s1 }
 0x5d7   :  { %477 = vrot.lane.b32.xlu2 %v1472_v49, %s1625_s1 }
 0x62a   :  { %v382_v50 = vpop.xlane.xlu0 %381 }
 0x62b   :  { %1546 = vrcp.f32 %v382_v50  ;;  %v397_v51 = vand.u32 2147483648, %v382_v50  ;;  %v395_v57 = vand.u32 2147483647, %v382_v50  ;;  %vm391_vm1 = vweird.f32 %v382_v50 }
 0x62d   :  { %v398_v60 = vor.u32 1.1754944e-38, %v397_v51  ;;  %vm396_vm4 = vcmp.eq.f32.partialorder %v395_v57, 8.507059e+37 }
 0x631   :  { %v1547_v52 = vpop.eup %1546 }
 0x632   :  { %v387_v53 = vmul.f32 %v1547_v52, %v382_v50  ;;  %v385_v54 = vpop.xlane.xlu2 %384  ;;  %vm392_vm0 = vweird.f32 %v1547_v52 }
 0x633   :  { %1548 = vrcp.f32 %v385_v54  ;;  %vm393_vm3 = vmor %vm391_vm1, %vm392_vm0  ;;  %v412_v2 = vand.u32 2147483648, %v385_v54  ;;  %v410_v4 = vand.u32 2147483647, %v385_v54  ;;  %vm406_vm2 = vweird.f32 %v385_v54 }
 0x634   :  { %v388_v55 = vsub.f32 1.0, %v387_v53 }
 0x635   :  { %v413_v6 = vor.u32 1.1754944e-38, %v412_v2  ;;  %vm411_vm7 = vcmp.eq.f32.partialorder %v410_v4, 8.507059e+37 }
 0x636   :  { %v389_v56 = vmul.f32 %v1547_v52, %v388_v55 }
 0x638   :  { %v390_v58 = vadd.f32 %v1547_v52, %v389_v56 }
 0x639   :  { %v1549_v59 = vpop.eup %1548 }
 0x63a   :  { %v402_v18 = vmul.f32 %v1549_v59, %v385_v54  ;;  %v478_v61 = vpop.permute.xlu2 %477  ;;  %v394_v62 = vsel %vm393_vm3, %v1547_v52, %v390_v58  ;;  %vm407_vm6 = vweird.f32 %v1549_v59 }
 0x63b   :  { %490 = vmatpush.bf16.msrb.mxu0 %v478_v61  ;;  %v399_v63 = vsel %vm396_vm4, %v398_v60, %v394_v62  ;;  %vm408_vm5 = vmor %vm406_vm2, %vm407_vm6 }
 0x63c   :  { %v403_v0 = vsub.f32 1.0, %v402_v18  ;;  %v400_v1 = vmul.f32 %v1543_v42, %v399_v63 }
 0x63d   :  { %v453_v10 = vpop.permute.xlu0 %452 }
 0x63e   :  { %v404_v3 = vmul.f32 %v1549_v59, %v403_v0  ;;  %1364 = vmatmul.msk.f32.vlgmr.msrb.gmra.mxu1 %vm203_vm11, %v400_v1  ;;  %1371 = vmatmul.msk.bf16.vlgmr.msrb.gmra.mxu0 %vm203_vm11, %v322_v24 }
 0x63f   :  { %465 = vmatpush.bf16.msrb.mxu2 %v453_v10  ;;  %v1476_v10 = vld [vmem:[%s2096_s4 + $0x18] sm:$0xff] }
 0x640   :  { %v405_v5 = vadd.f32 %v1549_v59, %v404_v3 }
 0x642   :  { %v409_v7 = vsel %vm408_vm5, %v1549_v59, %v405_v5 }
 0x643   :  { %v414_v8 = vsel %vm411_vm7, %v413_v6, %v409_v7 }
 0x644   :  { %v415_v9 = vmul.f32 %v1545_v45, %v414_v8  ;;  %v1478_v8 = vld [vmem:[%s2096_s4 + $0x28] sm:$0xff] }
 0x645   :  { %v501_v21 = vpop.permute.xlu0 %500  ;;  %652 = vmatpush.bf16.msra.mxu1 %v1478_v8 }
 0x646   :  { %1365 = vmatmul.msk.f32.gmra.mxu1 %vm203_vm11, %v415_v9  ;;  %v1477_v9 = vld [vmem:[%s2096_s4 + $0x20] sm:$0xff] }
 0x649   :  { %653 = vmatpush.bf16.msra.mxu1 %v1477_v9 }
 0x64d   :  { %654 = vmatpush.bf16.msra.mxu1 %v1476_v10 }
 0x6bb   :  { %v445_v11 = vpop.f32.mrf.mxu1  ;;  %v492_v15 = vpop.f32.mrf.mxu0 }
 0x6c3   :  { %v448_v12 = vpop.f32.mrf.mxu1  ;;  %v494_v25 = vpop.f32.mrf.mxu0 }
 0x6c4   :  { %v451_v13 = vpack.c.bf16 %v448_v12, %v445_v11  ;;  %v1475_v11 = vld [vmem:[%s2096_s4 + $0x10] sm:$0xff] }
 0x6c5   :  { %655 = vmatpush.bf16.msra.mxu1 %v1475_v11 }
 0x6c6   :  { %1366 = vmatmul.msk.bf16.vlgmr.msrb.gmra.mxu2 %vm203_vm11, %v451_v13 }
 0x749   :  { %v467_v16 = vpop.f32.mrf.mxu2 }
 0x74a   :  { %v493_v17 = vadd.f32 %v492_v15, %v467_v16 }
 0x74c   :  { %v497_v22 = vadd.f32 %v493_v17, %v1717_v29 }
 0x74e   :  { %v1831_v23 = vadd.f32 %v501_v21, %v497_v22 }
 0x750   :  { %v505_v24 = vsel %vm101_vm13, %v1831_v23, 0.0 }
 0x751   :  { %506 = vadd.xlane.f32.xlu1 %v505_v24  ;;  %v469_v26 = vpop.f32.mrf.mxu2 }
 0x752   :  { %v495_v27 = vadd.f32 %v494_v25, %v469_v26 }
 0x754   :  { %v498_v30 = vadd.f32 %v495_v27, %v1721_v31 }
 0x756   :  { %v1836_v32 = vadd.f32 %v501_v21, %v498_v30 }
 0x758   :  { %v508_v33 = vsel %vm101_vm13, %v1836_v32, 0.0 }
 0x759   :  { %509 = vadd.xlane.f32.xlu2 %v508_v33 }
 0x771   :  { %549 = vrot.lane.b32.xlu2 %v1728_v36, %s1621_s25 }
 0x7c4   :  { %v507_v29 = vpop.xlane.xlu1 %506 }
 0x7c5   :  { %v511_v34 = vmul.f32 %v507_v29, %v1732_v40 }
 0x7c7   :  { %v513_v19 = vsub.f32 %v1831_v23, %v511_v34 }
 0x7c9   :  { %v515_v37 = vmul.f32 %v513_v19, %v513_v19 }
 0x7cb   :  { %v517_v38 = vsel %vm101_vm13, %v515_v37, 0.0 }
 0x7cc   :  { %518 = vadd.xlane.f32.xlu0 %v517_v38  ;;  %v510_v39 = vpop.xlane.xlu2 %509 }
 0x7cd   :  { %v512_v31 = vmul.f32 %v510_v39, %v1732_v40 }
 0x7cf   :  { %v514_v14 = vsub.f32 %v1836_v32, %v512_v31 }
 0x7d1   :  { %v516_v20 = vmul.f32 %v514_v14, %v514_v14 }
 0x7d3   :  { %v520_v42 = vsel %vm101_vm13, %v516_v20, 0.0 }
 0x7d4   :  { %521 = vadd.xlane.f32.xlu1 %v520_v42  ;;  %v550_v63 = vpop.permute.xlu2 %549 }
 0x7e0   :  { %554 = vrot.lane.b32.xlu0 %v1728_v36, %s1625_s1 }
 0x7ed   :  { %665 = vrot.lane.b32.xlu1 %v1522_v48, %s1621_s25 }
 0x83f   :  { %v519_v44 = vpop.xlane.xlu0 %518 }
 0x840   :  { %v523_v45 = vmul.f32 %v519_v44, %v1732_v40 }
 0x842   :  { %v525_v47 = vadd.f32 1e-05, %v523_v45 }
 0x844   :  { %1550 = vrsqrt.f32 %v525_v47  ;;  %vm533_vm9 = vweird.f32 %v525_v47 }
 0x847   :  { %v522_v36 = vpop.xlane.xlu1 %521 }
 0x848   :  { %v524_v41 = vmul.f32 %v522_v36, %v1732_v40 }
 0x84a   :  { %v1551_v49 = vpop.eup %1550  ;;  %v526_v50 = vadd.f32 1e-05, %v524_v41 }
 0x84b   :  { %v528_v52 = vmul.f32 %v1551_v49, %v525_v47  ;;  %vm534_vm8 = vweird.f32 %v1551_v49 }
 0x84c   :  { %1552 = vrsqrt.f32 %v526_v50  ;;  %vm535_vm12 = vmor %vm533_vm9, %vm534_vm8  ;;  %vm543_vm15 = vweird.f32 %v526_v50 }
 0x84d   :  { %v529_v53 = vmul.f32 %v1551_v49, %v528_v52 }
 0x84f   :  { %v530_v54 = vmul.f32 0.5, %v529_v53 }
 0x851   :  { %v531_v55 = vsub.f32 1.5, %v530_v54 }
 0x852   :  { %v1553_v51 = vpop.eup %1552  ;;  %v555_v3 = vpop.permute.xlu0 %554 }
 0x853   :  { %v538_v56 = vmul.f32 %v1553_v51, %v526_v50  ;;  %v532_v57 = vmul.f32 %v1551_v49, %v531_v55  ;;  %vm544_vm14 = vweird.f32 %v1553_v51  ;;  %v1889_v50 = vld [vmem:[%s2097_s5 + $0x1] ss:$0 sm:$0xff] }
 0x854   :  { %vm545_vm0 = vmor %vm543_vm15, %vm544_vm14 }
 0x855   :  { %v539_v58 = vmul.f32 %v1553_v51, %v538_v56  ;;  %v536_v60 = vsel %vm535_vm12, %v1551_v49, %v532_v57 }
 0x856   :  { %v547_v61 = vmul.f32 %v536_v60, %v513_v19 }
 0x857   :  { %v540_v59 = vmul.f32 0.5, %v539_v58 }
 0x858   :  { %v552_v2 = vmul.f32 %v550_v63, %v547_v61  ;;  %v1479_v61 = vld [vmem:[%s2095_s3 + $0x10] sm:$0xff] }
 0x859   :  { %v541_v18 = vsub.f32 1.5, %v540_v59  ;;  %v1902_v59 = vld [vmem:[%s2095_s3 + $0x18] sm:$0xff] }
 0x85a   :  { %v557_v5 = vadd.f32 %v555_v3, %v552_v2  ;;  %754 = vmatpush.bf16.msra.mxu2 %v1902_v59 }
 0x85b   :  { %v542_v62 = vmul.f32 %v1553_v51, %v541_v18 }
 0x85d   :  { %v546_v0 = vsel %vm545_vm0, %v1553_v51, %v542_v62 }
 0x85e   :  { %v548_v1 = vmul.f32 %v546_v0, %v514_v14  ;;  %755 = vmatpush.bf16.msra.mxu2 %v1479_v61 }
 0x85f   :  { %v666_v44 = vpop.permute.xlu1 %665 }
 0x860   :  { %v553_v4 = vmul.f32 %v550_v63, %v548_v1 }
 0x862   :  { %v558_v6 = vadd.f32 %v555_v3, %v553_v4 }
 0x864   :  { %v559_v7 = vpack.c.bf16 %v558_v6, %v557_v5 }
 0x866   :  { %1380 = vmatmul.msk.bf16.vlgmr.msra.gmra.mxu3 %vm101_vm13, %v559_v7 }
 0x8e9   :  { %v589_v12 = vpop.f32.mrf.mxu3 }
 0x8ea   :  { %v590_v13 = vadd.f32 %v1522_v48, %v589_v12 }
 0x8ec   :  { %v594_v15 = vmul.f32 %v590_v13, %v590_v13 }
 0x8ee   :  { %v596_v16 = vmul.f32 %v594_v15, %v590_v13 }
 0x8f0   :  { %v598_v17 = vmul.f32 0.044715, %v596_v16 }
 0x8f1   :  { %v591_v21 = vpop.f32.mrf.mxu3 }
 0x8f2   :  { %v600_v22 = vadd.f32 %v598_v17, %v590_v13  ;;  %v592_v24 = vadd.f32 %v1522_v48, %v591_v21 }
 0x8f4   :  { %v602_v25 = vmul.f32 0.7978846, %v600_v22  ;;  %v595_v26 = vmul.f32 %v592_v24, %v592_v24 }
 0x8f6   :  { %v597_v27 = vmul.f32 %v595_v26, %v592_v24  ;;  %1554 = vtanh.f32 %v602_v25 }
 0x8f8   :  { %v599_v30 = vmul.f32 0.044715, %v597_v27 }
 0x8fa   :  { %v601_v33 = vadd.f32 %v599_v30, %v592_v24 }
 0x8fc   :  { %v603_v29 = vmul.f32 0.7978846, %v601_v33  ;;  %v1555_v34 = vpop.eup %1554  ;;  %v1916_v33 = vld [vmem:[%s2097_s5 + $0x3] ss:$0 sm:$0xff] }
 0x8fd   :  { %v606_v19 = vadd.f32 1.0, %v1555_v34 }
 0x8fe   :  { %1556 = vtanh.f32 %v603_v29 }
 0x8ff   :  { %v608_v38 = vmul.f32 0.5, %v606_v19 }
 0x901   :  { %v610_v14 = vmul.f32 %v608_v38, %v590_v13 }
 0x904   :  { %v1557_v37 = vpop.eup %1556 }
 0x905   :  { %v607_v39 = vadd.f32 1.0, %v1557_v37 }
 0x907   :  { %v609_v31 = vmul.f32 0.5, %v607_v39 }
 0x909   :  { %v611_v20 = vmul.f32 %v609_v31, %v592_v24 }
 0x90b   :  { %v612_v42 = vpack.c.bf16 %v611_v20, %v610_v14 }
 0x90d   :  { %1397 = vmatmul.msk.bf16.vlgmr.msra.gmra.mxu1 %vm47_vm10, %v612_v42 }
 0x98a   :  { %v657_v43 = vpop.f32.mrf.mxu1 }
 0x98b   :  { %v662_v45 = vadd.f32 %v657_v43, %v1831_v23 }
 0x98d   :  { %v1877_v46 = vadd.f32 %v666_v44, %v662_v45 }
 0x98f   :  { %v673_v47 = vsel %vm101_vm13, %v1877_v46, 0.0 }
 0x990   :  { %674 = vadd.xlane.f32.xlu0 %v673_v47 }
 0x992   :  { %v659_v48 = vpop.f32.mrf.mxu1 }
 0x993   :  { %v663_v36 = vadd.f32 %v659_v48, %v1836_v32 }
 0x995   :  { %v1882_v41 = vadd.f32 %v666_v44, %v663_v36 }
 0x997   :  { %v676_v49 = vsel %vm101_vm13, %v1882_v41, 0.0 }
 0x998   :  { %677 = vadd.xlane.f32.xlu2 %v676_v49 }
 0x9b0   :  { %721 = vrot.lane.b32.xlu2 %v1889_v50, %s1619_s18 }
 0xa03   :  { %v675_v23 = vpop.xlane.xlu0 %674 }
 0xa04   :  { %v679_v52 = vmul.f32 %v675_v23, %v1732_v40 }
 0xa06   :  { %v681_v53 = vsub.f32 %v1877_v46, %v679_v52 }
 0xa08   :  { %v683_v32 = vmul.f32 %v681_v53, %v681_v53 }
 0xa0a   :  { %v685_v54 = vsel %vm101_vm13, %v683_v32, 0.0 }
 0xa0b   :  { %686 = vadd.xlane.f32.xlu1 %v685_v54  ;;  %v678_v55 = vpop.xlane.xlu2 %677 }
 0xa0c   :  { %v680_v51 = vmul.f32 %v678_v55, %v1732_v40 }
 0xa0e   :  { %v682_v56 = vsub.f32 %v1882_v41, %v680_v51 }
 0xa10   :  { %v684_v57 = vmul.f32 %v682_v56, %v682_v56 }
 0xa12   :  { %v688_v58 = vsel %vm101_vm13, %v684_v57, 0.0 }
 0xa13   :  { %689 = vadd.xlane.f32.xlu0 %v688_v58  ;;  %v722_v24 = vpop.permute.xlu2 %721 }
 0xa7e   :  { %v687_v60 = vpop.xlane.xlu1 %686 }
 0xa7f   :  { %v691_v18 = vmul.f32 %v687_v60, %v1732_v40 }
 0xa81   :  { %v693_v62 = vadd.f32 1e-05, %v691_v18 }
 0xa83   :  { %1558 = vrsqrt.f32 %v693_v62  ;;  %vm701_vm3 = vweird.f32 %v693_v62 }
 0xa86   :  { %v690_v63 = vpop.xlane.xlu0 %689 }
 0xa87   :  { %v692_v0 = vmul.f32 %v690_v63, %v1732_v40 }
 0xa89   :  { %v1559_v1 = vpop.eup %1558  ;;  %v694_v2 = vadd.f32 1e-05, %v692_v0 }
 0xa8a   :  { %v696_v3 = vmul.f32 %v1559_v1, %v693_v62  ;;  %vm702_vm1 = vweird.f32 %v1559_v1 }
 0xa8b   :  { %1560 = vrsqrt.f32 %v694_v2  ;;  %vm703_vm4 = vmor %vm701_vm3, %vm702_vm1  ;;  %vm711_vm2 = vweird.f32 %v694_v2 }
 0xa8c   :  { %v697_v4 = vmul.f32 %v1559_v1, %v696_v3 }
 0xa8e   :  { %v698_v5 = vmul.f32 0.5, %v697_v4 }
 0xa90   :  { %v699_v6 = vsub.f32 1.5, %v698_v5 }
 0xa91   :  { %v1561_v7 = vpop.eup %1560 }
 0xa92   :  { %v700_v8 = vmul.f32 %v1559_v1, %v699_v6  ;;  %v706_v9 = vmul.f32 %v1561_v7, %v694_v2  ;;  %vm712_vm6 = vweird.f32 %v1561_v7 }
 0xa93   :  { %vm713_vm5 = vmor %vm711_vm2, %vm712_vm6 }
 0xa94   :  { %v707_v10 = vmul.f32 %v1561_v7, %v706_v9  ;;  %v704_v12 = vsel %vm703_vm4, %v1559_v1, %v700_v8 }
 0xa95   :  { %v715_v15 = vmul.f32 %v704_v12, %v681_v53 }
 0xa96   :  { %v708_v11 = vmul.f32 0.5, %v707_v10 }
 0xa97   :  { %v718_v22 = vmul.f32 %v1889_v50, %v715_v15 }
 0xa98   :  { %v709_v13 = vsub.f32 1.5, %v708_v11 }
 0xa99   :  { %v724_v26 = vadd.f32 %v722_v24, %v718_v22  ;;  %v1481_v22 = vld [vmem:[%s2095_s3 + $0x10] sm:$0xff] }
 0xa9a   :  { %v710_v16 = vmul.f32 %v1561_v7, %v709_v13 }
 0xa9c   :  { %v714_v17 = vsel %vm713_vm5, %v1561_v7, %v710_v16 }
 0xa9d   :  { %v716_v21 = vmul.f32 %v714_v17, %v682_v56 }
 0xa9f   :  { %v719_v25 = vmul.f32 %v1889_v50, %v716_v21 }
 0xaa1   :  { %v725_v27 = vadd.f32 %v722_v24, %v719_v25 }
 0xaa3   :  { %v726_v30 = vpack.c.bf16 %v725_v27, %v724_v26 }
 0xaa5   :  { %1410 = vmatmul.msk.bf16.vlgmr.msra.gmra.mxu2 %vm101_vm13, %v726_v30 }
 0xb28   :  { %v757_v29 = vpop.f32.mrf.mxu2 }
 0xb29   :  { %v1919_v34 = vadd.f32 %v1916_v33, %v757_v29 }
 0xb2b   :  { %764 = vrot.lane.b32.xlu1 %v1919_v34, %s1619_s18 }
 0xb30   :  { %v759_v19 = vpop.f32.mrf.mxu2 }
 0xb31   :  { %v1924_v37 = vadd.f32 %v1916_v33, %v759_v19 }
 0xb33   :  { %895 = vrot.lane.b32.xlu2 %v1924_v37, %s1623_s27  ;;  %766 = vrot.lane.b32.xlu0 %v1924_v37, %s1619_s18  ;;  %v1515_v12 = vpack.i.bf16 %v1919_v34, %v1924_v37 }
 0xb34   :  { %891 = vrot.lane.b32.xlu1 %v1924_v37, %s1622_s26 }
 0xb3b   :  { %889 = vrot.lane.b32.xlu2 %v1919_v34, %s1622_s26  ;;  %893 = vrot.lane.b32.xlu0 %v1919_v34, %s1623_s27  ;;  %s1332_s26 = sshll.u32 %s1626_s7, 4  ;;  %s1333_s26 = int_to_ptr.vmem [resolvable:$true] %s1332_s26 }
 0xb8d   :  { %v896_v38 = vpop.permute.xlu2 %895 }
 0xb8e   :  { %1419 = vmatpush.xpose.msk.msrb.mxu1 %vm203_vm11, %v896_v38 }
 0xb95   :  { %v890_v20 = vpop.permute.xlu2 %889 }
 0xb9d   :  { %v765_v31 = vpop.permute.xlu1 %764 }
 0xba5   :  { %v767_v39 = vpop.permute.xlu0 %766 }
 0xba6   :  { %1411 = vmatpush.xpose.msk.msra.mxu0 %vm203_vm11, %v767_v39  ;;  %v892_v42 = vpop.permute.xlu1 %891 }
 0xbaa   :  { %1412 = vmatpush.xpose.msk.msra.mxu0 %vm203_vm11, %v765_v31 }
 0xbad   :  { %v894_v14 = vpop.permute.xlu0 %893  ;;  %1413 = vmatmul.msk.f32.vlgmr.msra.gmra.mxu0 %vm203_vm11, %v1919_v34 }
 0xbae   :  { %1420 = vmatpush.xpose.msk.msrb.mxu1 %vm203_vm11, %v894_v14 }
 0xbb1   :  { %1421 = vmatmul.msk.f32.vlgmr.msrb.gmra.mxu1 %vm203_vm11, %v890_v20 }
 0xbb5   :  { %1414 = vmatmul.msk.f32.gmra.mxu0 %vm203_vm11, %v1924_v37 }
 0xbb9   :  { %1422 = vmatmul.msk.f32.gmra.mxu1 %vm203_vm11, %v892_v42 }
 0xc2a   :  { %v793_v43 = vpop.f32.mrf.mxu0 }
 0xc2b   :  { %v799_v44 = vmul.f32 0.25, %v793_v43 }
 0xc2d   :  { %v801_v45 = vadd.f32 %v799_v44, %v1772_v28 }
 0xc2e   :  { %v922_v47 = vpop.f32.mrf.mxu1 }
 0xc2f   :  { %v928_v48 = vmul.f32 0.25, %v922_v47  ;;  %v803_v36 = vsel %vm203_vm11, %v801_v45, -inf }
 0xc30   :  { %804 = vmax.xlane.f32.xlu0 %v803_v36 }
 0xc31   :  { %v930_v49 = vadd.f32 %v928_v48, %v1772_v28 }
 0xc32   :  { %v796_v23 = vpop.f32.mrf.mxu0 }
 0xc33   :  { %v800_v52 = vmul.f32 0.25, %v796_v23  ;;  %v932_v53 = vsel %vm203_vm11, %v930_v49, -inf }
 0xc34   :  { %933 = vmax.xlane.f32.xlu2 %v932_v53 }
 0xc35   :  { %v802_v32 = vadd.f32 %v800_v52, %v1781_v35 }
 0xc36   :  { %v925_v54 = vpop.f32.mrf.mxu1 }
 0xc37   :  { %v929_v55 = vmul.f32 0.25, %v925_v54  ;;  %v806_v51 = vsel %vm203_vm11, %v802_v32, -inf }
 0xc38   :  { %807 = vmax.xlane.f32.xlu1 %v806_v51 }
 0xc39   :  { %v931_v56 = vadd.f32 %v929_v55, %v1781_v35 }
 0xc3b   :  { %v935_v57 = vsel %vm203_vm11, %v931_v56, -inf }
 0xc3c   :  { %936 = vmax.xlane.f32.xlu0 %v935_v57 }
 0xca3   :  { %v805_v58 = vpop.xlane.xlu0 %804 }
 0xca4   :  { %v809_v60 = vsub.f32 %v801_v45, %v805_v58 }
 0xca6   :  { %v811_v28 = vmul.f32 1.442695, %v809_v60 }
 0xca7   :  { %v934_v18 = vpop.xlane.xlu2 %933 }
 0xca8   :  { %1562 = vpow2.f32 %v811_v28  ;;  %v938_v61 = vsub.f32 %v930_v49, %v934_v18 }
 0xcaa   :  { %v940_v62 = vmul.f32 1.442695, %v938_v61 }
 0xcab   :  { %v808_v63 = vpop.xlane.xlu1 %807 }
 0xcac   :  { %1564 = vpow2.f32 %v940_v62  ;;  %v810_v0 = vsub.f32 %v802_v32, %v808_v63 }
 0xcae   :  { %v1954_v1 = vpop.eup %1562  ;;  %v813_v2 = vmul.f32 1.442695, %v810_v0 }
 0xcaf   :  { %v937_v3 = vpop.xlane.xlu0 %936  ;;  %v815_v35 = vsel %vm203_vm11, %v1954_v1, 0.0 }
 0xcb0   :  { %1566 = vpow2.f32 %v813_v2  ;;  %v939_v4 = vsub.f32 %v931_v56, %v937_v3  ;;  %816 = vadd.xlane.f32.xlu2 %v815_v35 }
 0xcb2   :  { %v1958_v5 = vpop.eup %1564  ;;  %v942_v6 = vmul.f32 1.442695, %v939_v4 }
 0xcb3   :  { %v944_v7 = vsel %vm203_vm11, %v1958_v5, 0.0 }
 0xcb4   :  { %1568 = vpow2.f32 %v942_v6  ;;  %945 = vadd.xlane.f32.xlu1 %v944_v7 }
 0xcb6   :  { %v1962_v8 = vpop.eup %1566 }
 0xcb7   :  { %v818_v9 = vsel %vm203_vm11, %v1962_v8, 0.0 }
 0xcb8   :  { %819 = vadd.xlane.f32.xlu0 %v818_v9 }
 0xcba   :  { %v1966_v10 = vpop.eup %1568 }
 0xcbb   :  { %v947_v11 = vsel %vm203_vm11, %v1966_v10, 0.0 }
 0xcbc   :  { %948 = vadd.xlane.f32.xlu2 %v947_v11 }
 0xccc   :  { %1516 = vrot.lane.b32.xlu0 %v1515_v12, %s1624_s28  ;;  %s1334_s28 = sshll.u32 %s2098_s6, 4  ;;  %s1335_s28 = int_to_ptr.hbm [resolvable:$true] %s1334_s28 }
 0xccd   :  { %1511 = vrot.lane.b32.xlu1 %v1515_v12, %s1621_s25 }
 0xcd4   :  { %1016 = vrot.lane.b32.xlu0 %v1902_v59, %s1625_s1  ;;  %1041 = vrot.lane.b32.xlu2 %v1481_v22, %s1625_s1 }
 0xcd5   :  { %1064 = vrot.lane.b32.xlu1 %v1916_v33, %s1625_s1 }
 0xd23   :  { %v817_v13 = vpop.xlane.xlu2 %816 }
 0xd24   :  { %1570 = vrcp.f32 %v817_v13  ;;  %v832_v42 = vand.u32 2147483648, %v817_v13  ;;  %vm826_vm12 = vweird.f32 %v817_v13  ;;  %v830_v44 = vand.u32 2147483647, %v817_v13 }
 0xd26   :  { %v833_v23 = vor.u32 1.1754944e-38, %v832_v42  ;;  %vm831_vm1 = vcmp.eq.f32.partialorder %v830_v44, 8.507059e+37  ;;  %v1483_v44 = vld [vmem:[%s2096_s4 + $0x38] sm:$0xff] }
 0xd27   :  { %v946_v15 = vpop.xlane.xlu1 %945  ;;  %1151 = vmatpush.bf16.msra.mxu1 %v1483_v44 }
 0xd28   :  { %1572 = vrcp.f32 %v946_v15  ;;  %v961_v39 = vand.u32 2147483648, %v946_v15  ;;  %vm955_vm9 = vweird.f32 %v946_v15  ;;  %v959_v43 = vand.u32 2147483647, %v946_v15 }
 0xd2a   :  { %v1571_v16 = vpop.eup %1570  ;;  %v962_v36 = vor.u32 1.1754944e-38, %v961_v39  ;;  %vm960_vm0 = vcmp.eq.f32.partialorder %v959_v43, 8.507059e+37 }
 0xd2b   :  { %v1978_v17 = vpop.xlane.xlu0 %819  ;;  %v822_v21 = vmul.f32 %v1571_v16, %v817_v13  ;;  %vm827_vm8 = vweird.f32 %v1571_v16 }
 0xd2c   :  { %1574 = vrcp.f32 %v1978_v17  ;;  %vm828_vm15 = vmor %vm826_vm12, %vm827_vm8  ;;  %v847_v32 = vand.u32 2147483648, %v1978_v17  ;;  %vm841_vm2 = vweird.f32 %v1978_v17  ;;  %v845_v0 = vand.u32 2147483647, %v1978_v17 }
 0xd2d   :  { %v823_v26 = vsub.f32 1.0, %v822_v21 }
 0xd2e   :  { %v1573_v24 = vpop.eup %1572  ;;  %v848_v4 = vor.u32 1.1754944e-38, %v847_v32 }
 0xd2f   :  { %v951_v25 = vmul.f32 %v1573_v24, %v946_v15  ;;  %v1984_v59 = vpop.xlane.xlu2 %948  ;;  %v824_v29 = vmul.f32 %v1571_v16, %v823_v26  ;;  %vm956_vm7 = vweird.f32 %v1573_v24 }
 0xd30   :  { %1576 = vrcp.f32 %v1984_v59  ;;  %vm957_vm14 = vmor %vm955_vm9, %vm956_vm7  ;;  %v976_v58 = vand.u32 2147483648, %v1984_v59  ;;  %vm970_vm6 = vweird.f32 %v1984_v59  ;;  %v974_v62 = vand.u32 2147483647, %v1984_v59 }
 0xd31   :  { %v952_v27 = vsub.f32 1.0, %v951_v25  ;;  %v825_v31 = vadd.f32 %v1571_v16, %v824_v29  ;;  %vm846_vm9 = vcmp.eq.f32.partialorder %v845_v0, 8.507059e+37 }
 0xd32   :  { %v1988_v30 = vpop.eup %1574  ;;  %v977_v3 = vor.u32 1.1754944e-38, %v976_v58  ;;  %vm975_vm8 = vcmp.eq.f32.partialorder %v974_v62, 8.507059e+37 }
 0xd33   :  { %v953_v33 = vmul.f32 %v1573_v24, %v952_v27  ;;  %v837_v34 = vmul.f32 %v1988_v30, %v1978_v17  ;;  %v829_v48 = vsel %vm828_vm15, %v1571_v16, %v825_v31  ;;  %vm842_vm4 = vweird.f32 %v1988_v30 }
 0xd34   :  { %v834_v51 = vsel %vm831_vm1, %v833_v23, %v829_v48  ;;  %vm843_vm7 = vmor %vm841_vm2, %vm842_vm4 }
 0xd35   :  { %v954_v38 = vadd.f32 %v1573_v24, %v953_v33  ;;  %v838_v14 = vsub.f32 1.0, %v837_v34  ;;  %v835_v63 = vmul.f32 %v1954_v1, %v834_v51 }
 0xd36   :  { %v1577_v19 = vpop.eup %1576 }
 0xd37   :  { %v966_v37 = vmul.f32 %v1577_v19, %v1984_v59  ;;  %v958_v45 = vsel %vm957_vm14, %v1573_v24, %v954_v38  ;;  %v839_v49 = vmul.f32 %v1988_v30, %v838_v14  ;;  %vm971_vm3 = vweird.f32 %v1577_v19  ;;  %v1042_v11 = vpop.permute.xlu2 %1041 }
 0xd38   :  { %v963_v53 = vsel %vm960_vm0, %v962_v36, %v958_v45  ;;  %vm972_vm5 = vmor %vm970_vm6, %vm971_vm3  ;;  %v1482_v36 = vld [vmem:[%s2096_s4 + $0x30] sm:$0xff] }
 0xd39   :  { %v967_v20 = vsub.f32 1.0, %v966_v37  ;;  %v840_v28 = vadd.f32 %v1988_v30, %v839_v49  ;;  %v964_v61 = vmul.f32 %v1958_v5, %v963_v53  ;;  %1152 = vmatpush.bf16.msra.mxu1 %v1482_v36  ;;  %v1525_v49 = vld [vmem:[%s2097_s5 + $0x5] ss:$0 sm:$0xff] }
 0xd3b   :  { %v968_v47 = vmul.f32 %v1577_v19, %v967_v20  ;;  %v844_v35 = vsel %vm843_vm7, %v1988_v30, %v840_v28  ;;  %vm1295_vm7 = vcmask 1040384  }
 0xd3c   :  { %v849_v6 = vsel %vm846_vm9, %v848_v4, %v844_v35 }
 0xd3d   :  { %v969_v57 = vadd.f32 %v1577_v19, %v968_v47  ;;  %v850_v7 = vmul.f32 %v1962_v8, %v849_v6 }
 0xd3e   :  { %v1517_v52 = vpop.permute.xlu0 %1516 }
 0xd3f   :  { %v1518_v54 = vunpack.i.l.bf16 %v1517_v52  ;;  %v1512_v55 = vpop.permute.xlu1 %1511  ;;  %v1519_v60 = vunpack.i.h.bf16 %v1517_v52  ;;  %v973_v2 = vsel %vm972_vm5, %v1577_v19, %v969_v57 }
 0xd40   :  { %v1513_v56 = vunpack.i.l.bf16 %v1512_v55  ;;  %v1514_v18 = vunpack.i.h.bf16 %v1512_v55  ;;  %v978_v5 = vsel %vm975_vm8, %v977_v3, %v973_v2 }
 0xd41   :  { %1006 = vmatpush.msrb.mxu2 %v1518_v54  ;;  %v979_v1 = vmul.f32 %v1966_v10, %v978_v5 }
 0xd42   :  { %877 = vmatpush.msrb.mxu3 %v1513_v56 }
 0xd43   :  { %1007 = vmatpush.msrb.mxu2 %v1519_v60 }
 0xd44   :  { %878 = vmatpush.msrb.mxu3 %v1514_v18  ;;  %1423 = vmatmul.msk.f32.vlgmr.msrb.gmra.mxu2 %vm203_vm11, %v964_v61 }
 0xd45   :  { %1415 = vmatmul.msk.f32.vlgmr.msrb.gmra.mxu3 %vm203_vm11, %v835_v63 }
 0xd46   :  { %v1017_v9 = vpop.permute.xlu0 %1016  ;;  %1054 = vmatpush.bf16.msra.mxu3 %v1042_v11  ;;  %v1486_v11 = vld [vmem:[%s2096_s4 + $0x50] sm:$0xff] }
 0xd47   :  { %1029 = vmatpush.bf16.msrb.mxu0 %v1017_v9  ;;  %v1065_v24 = vpop.permute.xlu1 %1064  ;;  %v1487_v9 = vld [vmem:[%s2096_s4 + $0x58] sm:$0xff] }
 0xd48   :  { %1217 = vmatpush.bf16.msra.mxu2 %v1487_v9 }
 0xd4c   :  { %1424 = vmatmul.msk.f32.gmra.mxu2 %vm203_vm11, %v979_v1 }
 0xd4d   :  { %1416 = vmatmul.msk.f32.gmra.mxu3 %vm203_vm11, %v850_v7  ;;  %1218 = vmatpush.bf16.msra.mxu2 %v1486_v11 }
 0xdc7   :  { %v1009_v12 = vpop.f32.mrf.mxu2 }
 0xdc8   :  { %v880_v13 = vpop.f32.mrf.mxu3 }
 0xdcf   :  { %v1012_v15 = vpop.f32.mrf.mxu2 }
 0xdd0   :  { %v1015_v16 = vpack.c.bf16 %v1012_v15, %v1009_v12  ;;  %v883_v17 = vpop.f32.mrf.mxu3  ;;  %v1485_v12 = vld [vmem:[%s2096_s4 + $0x48] sm:$0xff]  ;;  %v1484_v15 = vld [vmem:[%s2096_s4 + $0x40] sm:$0xff] }
 0xdd1   :  { %v886_v21 = vpack.c.bf16 %v883_v17, %v880_v13  ;;  %1219 = vmatpush.bf16.msra.mxu2 %v1485_v12 }
 0xdd2   :  { %1425 = vmatmul.msk.bf16.vlgmr.msrb.gmra.mxu0 %vm203_vm11, %v1015_v16 }
 0xdd3   :  { %1430 = vmatmul.msk.bf16.vlgmr.msra.gmra.mxu3 %vm203_vm11, %v886_v21 }
 0xdd5   :  { %1220 = vmatpush.bf16.msra.mxu2 %v1484_v15 }
 0xe4f   :  { %v1031_v10 = vpop.f32.mrf.mxu0 }
 0xe56   :  { %v1056_v8 = vpop.f32.mrf.mxu3 }
 0xe57   :  { %v1057_v22 = vadd.f32 %v1056_v8, %v1031_v10  ;;  %v1033_v27 = vpop.f32.mrf.mxu0 }
 0xe59   :  { %v1061_v25 = vadd.f32 %v1057_v22, %v1877_v46 }
 0xe5b   :  { %v2014_v59 = vadd.f32 %v1065_v24, %v1061_v25 }
 0xe5d   :  { %v1069_v26 = vsel %vm101_vm13, %v2014_v59, 0.0 }
 0xe5e   :  { %v1058_v30 = vpop.f32.mrf.mxu3  ;;  %1070 = vadd.xlane.f32.xlu2 %v1069_v26 }
 0xe5f   :  { %v1059_v33 = vadd.f32 %v1058_v30, %v1033_v27 }
 0xe61   :  { %v1062_v29 = vadd.f32 %v1059_v33, %v1882_v41 }
 0xe63   :  { %v2019_v34 = vadd.f32 %v1065_v24, %v1062_v29 }
 0xe65   :  { %v1072_v19 = vsel %vm101_vm13, %v2019_v34, 0.0 }
 0xe66   :  { %1073 = vadd.xlane.f32.xlu0 %v1072_v19 }
 0xe7a   :  { %1113 = vrot.lane.b32.xlu0 %v1889_v50, %s1621_s25 }
 0xed1   :  { %v1071_v46 = vpop.xlane.xlu2 %1070 }
 0xed2   :  { %v1075_v37 = vmul.f32 %v1071_v46, %v1732_v40 }
 0xed4   :  { %v1077_v38 = vsub.f32 %v2014_v59, %v1075_v37 }
 0xed6   :  { %v1079_v39 = vmul.f32 %v1077_v38, %v1077_v38 }
 0xed8   :  { %v1081_v31 = vsel %vm101_vm13, %v1079_v39, 0.0 }
 0xed9   :  { %v1074_v14 = vpop.xlane.xlu0 %1073  ;;  %1082 = vadd.xlane.f32.xlu1 %v1081_v31 }
 0xeda   :  { %v1076_v41 = vmul.f32 %v1074_v14, %v1732_v40 }
 0xedc   :  { %v1078_v20 = vsub.f32 %v2019_v34, %v1076_v41 }
 0xede   :  { %v1080_v42 = vmul.f32 %v1078_v20, %v1078_v20 }
 0xee0   :  { %v1084_v43 = vsel %vm101_vm13, %v1080_v42, 0.0 }
 0xee1   :  { %1085 = vadd.xlane.f32.xlu2 %v1084_v43 }
 0xeec   :  { %v1114_v63 = vpop.permute.xlu0 %1113 }
 0xef2   :  { %1118 = vrot.lane.b32.xlu1 %v1889_v50, %s1625_s1 }
 0xef9   :  { %1230 = vrot.lane.b32.xlu2 %v1525_v49, %s1621_s25 }
 0xf4c   :  { %v1083_v45 = vpop.xlane.xlu1 %1082 }
 0xf4d   :  { %v1087_v47 = vmul.f32 %v1083_v45, %v1732_v40 }
 0xf4f   :  { %v1089_v48 = vadd.f32 1e-05, %v1087_v47 }
 0xf51   :  { %1578 = vrsqrt.f32 %v1089_v48  ;;  %vm1097_vm12 = vweird.f32 %v1089_v48 }
 0xf54   :  { %v1086_v50 = vpop.xlane.xlu2 %1085 }
 0xf55   :  { %v1088_v23 = vmul.f32 %v1086_v50, %v1732_v40 }
 0xf57   :  { %v1579_v52 = vpop.eup %1578  ;;  %v1090_v53 = vadd.f32 1e-05, %v1088_v23  ;;  %v1526_v23 = vld [vmem:[%s2097_s5 + $0x6] ss:$0 sm:$0xff] }
 0xf58   :  { %v1092_v32 = vmul.f32 %v1579_v52, %v1089_v48  ;;  %vm1098_vm11 = vweird.f32 %v1579_v52 }
 0xf59   :  { %1580 = vrsqrt.f32 %v1090_v53  ;;  %vm1099_vm14 = vmor %vm1097_vm12, %vm1098_vm11  ;;  %vm1107_vm0 = vweird.f32 %v1090_v53 }
 0xf5a   :  { %v1093_v54 = vmul.f32 %v1579_v52, %v1092_v32 }
 0xf5c   :  { %v1094_v55 = vmul.f32 0.5, %v1093_v54  ;;  %v1231_v43 = vpop.permute.xlu2 %1230 }
 0xf5e   :  { %v1095_v51 = vsub.f32 1.5, %v1094_v55 }
 0xf5f   :  { %v1581_v56 = vpop.eup %1580 }
 0xf60   :  { %v1102_v57 = vmul.f32 %v1581_v56, %v1090_v53  ;;  %v1096_v58 = vmul.f32 %v1579_v52, %v1095_v51  ;;  %vm1108_vm15 = vweird.f32 %v1581_v56 }
 0xf61   :  { %vm1109_vm1 = vmor %vm1107_vm0, %vm1108_vm15 }
 0xf62   :  { %v1103_v60 = vmul.f32 %v1581_v56, %v1102_v57  ;;  %v1100_v18 = vsel %vm1099_vm14, %v1579_v52, %v1096_v58 }
 0xf63   :  { %v1111_v62 = vmul.f32 %v1100_v18, %v1077_v38 }
 0xf64   :  { %v1104_v28 = vmul.f32 0.5, %v1103_v60  ;;  %v1119_v4 = vpop.permute.xlu1 %1118 }
 0xf65   :  { %v1116_v35 = vmul.f32 %v1114_v63, %v1111_v62  ;;  %v1299_v62 = vld [vmem:[%s2097_s5 + $0x10] sm:$0xff] }
 0xf66   :  { %v1105_v61 = vsub.f32 1.5, %v1104_v28  ;;  %v1301_v28 = vld [vmem:[%s2097_s5 + $0x20] sm:$0xff] }
 0xf67   :  { %v1121_v6 = vadd.f32 %v1119_v4, %v1116_v35  ;;  %1318 = vmatpush.msra.mxu0 %v1301_v28 }
 0xf68   :  { %v1106_v0 = vmul.f32 %v1581_v56, %v1105_v61  ;;  %v1300_v61 = vld [vmem:[%s2097_s5 + $0x18] sm:$0xff] }
 0xf69   :  { %1319 = vmatpush.msra.mxu0 %v1300_v61 }
 0xf6a   :  { %v1110_v2 = vsel %vm1109_vm1, %v1581_v56, %v1106_v0 }
 0xf6b   :  { %v1112_v3 = vmul.f32 %v1110_v2, %v1078_v20  ;;  %1320 = vmatpush.msra.mxu0 %v1299_v62 }
 0xf6d   :  { %v1117_v5 = vmul.f32 %v1114_v63, %v1112_v3  ;;  %v1298_v63 = vld [vmem:[%s2097_s5 + $0x8] sm:$0xff] }
 0xf6e   :  { %1321 = vmatpush.msra.mxu0 %v1298_v63 }
 0xf6f   :  { %v1122_v1 = vadd.f32 %v1119_v4, %v1117_v5 }
 0xf71   :  { %v1123_v7 = vpack.c.bf16 %v1122_v1, %v1121_v6 }
 0xf73   :  { %1443 = vmatmul.msk.bf16.vlgmr.msra.gmra.mxu1 %vm101_vm13, %v1123_v7 }
 0xff0   :  { %v1154_v13 = vpop.f32.mrf.mxu1 }
 0xff1   :  { %v1155_v16 = vadd.f32 %v1525_v49, %v1154_v13 }
 0xff3   :  { %v1159_v17 = vmul.f32 %v1155_v16, %v1155_v16 }
 0xff5   :  { %v1161_v21 = vmul.f32 %v1159_v17, %v1155_v16 }
 0xff7   :  { %v1163_v10 = vmul.f32 0.044715, %v1161_v21 }
 0xff8   :  { %v1156_v8 = vpop.f32.mrf.mxu1 }
 0xff9   :  { %v1165_v22 = vadd.f32 %v1163_v10, %v1155_v16  ;;  %v1157_v24 = vadd.f32 %v1525_v49, %v1156_v8 }
 0xffb   :  { %v1167_v25 = vmul.f32 0.7978846, %v1165_v22  ;;  %v1160_v26 = vmul.f32 %v1157_v24, %v1157_v24 }
 0xffd   :  { %v1162_v27 = vmul.f32 %v1160_v26, %v1157_v24  ;;  %1582 = vtanh.f32 %v1167_v25 }
 0xfff   :  { %v1164_v30 = vmul.f32 0.044715, %v1162_v27 }
0x1001   :  { %v1166_v33 = vadd.f32 %v1164_v30, %v1157_v24 }
0x1003   :  { %v1168_v29 = vmul.f32 0.7978846, %v1166_v33  ;;  %v1583_v19 = vpop.eup %1582 }
0x1004   :  { %v1171_v46 = vadd.f32 1.0, %v1583_v19 }
0x1005   :  { %1584 = vtanh.f32 %v1168_v29  ;;  %v1527_v29 = vld [vmem:[%s2097_s5 + $0x7] ss:$0 sm:$0xff] }
0x1006   :  { %v1173_v38 = vmul.f32 0.5, %v1171_v46 }
0x1008   :  { %v1175_v14 = vmul.f32 %v1173_v38, %v1155_v16 }
0x100b   :  { %v1585_v37 = vpop.eup %1584 }
0x100c   :  { %v1172_v39 = vadd.f32 1.0, %v1585_v37 }
0x100e   :  { %v1174_v31 = vmul.f32 0.5, %v1172_v39 }
0x1010   :  { %v1176_v41 = vmul.f32 %v1174_v31, %v1157_v24 }
0x1012   :  { %v1177_v20 = vpack.c.bf16 %v1176_v41, %v1175_v14 }
0x1014   :  { %1468 = vmatmul.msk.bf16.vlgmr.msra.gmra.mxu2 %vm47_vm10, %v1177_v20 }
0x1097   :  { %v1222_v42 = vpop.f32.mrf.mxu2 }
0x1098   :  { %v1227_v44 = vadd.f32 %v1222_v42, %v2014_v59 }
0x109a   :  { %v1233_v45 = vadd.f32 %v1231_v43, %v1227_v44 }
0x109c   :  { %v1236_v47 = vsel %vm101_vm13, %v1233_v45, 0.0 }
0x109d   :  { %1237 = vadd.xlane.f32.xlu0 %v1236_v47 }
0x109f   :  { %v1224_v48 = vpop.f32.mrf.mxu2 }
0x10a0   :  { %v1228_v36 = vadd.f32 %v1224_v48, %v2019_v34 }
0x10a2   :  { %v1234_v49 = vadd.f32 %v1231_v43, %v1228_v36 }
0x10a4   :  { %v1239_v50 = vsel %vm101_vm13, %v1234_v49, 0.0 }
0x10a5   :  { %1240 = vadd.xlane.f32.xlu1 %v1239_v50 }
0x10be   :  { %1284 = vrot.lane.b32.xlu1 %v1526_v23, %s1619_s18 }
0x1110   :  { %v1238_v52 = vpop.xlane.xlu0 %1237 }
0x1111   :  { %v1242_v59 = vmul.f32 %v1238_v52, %v1732_v40 }
0x1113   :  { %v1244_v53 = vsub.f32 %v1233_v45, %v1242_v59 }
0x1115   :  { %v1246_v32 = vmul.f32 %v1244_v53, %v1244_v53 }
0x1117   :  { %v1248_v54 = vsel %vm101_vm13, %v1246_v32, 0.0 }
0x1118   :  { %v1241_v55 = vpop.xlane.xlu1 %1240  ;;  %1249 = vadd.xlane.f32.xlu2 %v1248_v54 }
0x1119   :  { %v1243_v34 = vmul.f32 %v1241_v55, %v1732_v40 }
0x111b   :  { %v1245_v51 = vsub.f32 %v1234_v49, %v1243_v34 }
0x111d   :  { %v1247_v56 = vmul.f32 %v1245_v51, %v1245_v51 }
0x111f   :  { %v1251_v57 = vsel %vm101_vm13, %v1247_v56, 0.0 }
0x1120   :  { %1252 = vadd.xlane.f32.xlu0 %v1251_v57 }
0x1130   :  { %v1285_v10 = vpop.permute.xlu1 %1284 }
0x118b   :  { %v1250_v58 = vpop.xlane.xlu2 %1249 }
0x118c   :  { %v1254_v60 = vmul.f32 %v1250_v58, %v1732_v40 }
0x118e   :  { %v1256_v18 = vadd.f32 1e-05, %v1254_v60 }
0x1190   :  { %1586 = vrsqrt.f32 %v1256_v18  ;;  %vm1264_vm3 = vweird.f32 %v1256_v18 }
0x1193   :  { %v1253_v0 = vpop.xlane.xlu0 %1252 }
0x1194   :  { %v1255_v2 = vmul.f32 %v1253_v0, %v1732_v40 }
0x1196   :  { %v1587_v3 = vpop.eup %1586  ;;  %v1257_v35 = vadd.f32 1e-05, %v1255_v2 }
0x1197   :  { %v1259_v4 = vmul.f32 %v1587_v3, %v1256_v18  ;;  %vm1265_vm10 = vweird.f32 %v1587_v3 }
0x1198   :  { %1588 = vrsqrt.f32 %v1257_v35  ;;  %vm1266_vm4 = vmor %vm1264_vm3, %vm1265_vm10  ;;  %vm1274_vm2 = vweird.f32 %v1257_v35 }
0x1199   :  { %v1260_v5 = vmul.f32 %v1587_v3, %v1259_v4 }
0x119b   :  { %v1261_v6 = vmul.f32 0.5, %v1260_v5 }
0x119d   :  { %v1262_v1 = vsub.f32 1.5, %v1261_v6 }
0x119e   :  { %v1589_v7 = vpop.eup %1588 }
0x119f   :  { %v1269_v9 = vmul.f32 %v1589_v7, %v1257_v35  ;;  %v1263_v11 = vmul.f32 %v1587_v3, %v1262_v1  ;;  %vm1275_vm6 = vweird.f32 %v1589_v7 }
0x11a0   :  { %vm1276_vm5 = vmor %vm1274_vm2, %vm1275_vm6 }
0x11a1   :  { %v1270_v12 = vmul.f32 %v1589_v7, %v1269_v9  ;;  %v1267_v13 = vsel %vm1266_vm4, %v1587_v3, %v1263_v11 }
0x11a2   :  { %v1278_v16 = vmul.f32 %v1267_v13, %v1244_v53 }
0x11a3   :  { %v1271_v15 = vmul.f32 0.5, %v1270_v12 }
0x11a4   :  { %v1281_v21 = vmul.f32 %v1526_v23, %v1278_v16 }
0x11a5   :  { %v1272_v17 = vsub.f32 1.5, %v1271_v15 }
0x11a6   :  { %v1287_v25 = vadd.f32 %v1285_v10, %v1281_v21 }
0x11a7   :  { %v1273_v40 = vmul.f32 %v1589_v7, %v1272_v17 }
0x11a8   :  { %v1290_v27 = vrot.slane %v1287_v25, 7 }
0x11a9   :  { %v1277_v8 = vsel %vm1276_vm5, %v1589_v7, %v1273_v40 }
0x11aa   :  { %v1279_v22 = vmul.f32 %v1277_v8, %v1245_v51 }
0x11ac   :  { %v1282_v24 = vmul.f32 %v1526_v23, %v1279_v22 }
0x11ae   :  { %v1288_v26 = vadd.f32 %v1285_v10, %v1282_v24 }
0x11b0   :  { %v1293_v30 = vrot.slane %v1288_v26, 6 }
0x11b2   :  { %v1296_v33 = vsel %vm1295_vm7, %v1290_v27, %v1293_v30 }
0x11b3   :  { %1469 = vmatmul.msk.f32.vlgmr.msra.gmra.mxu0 %vm101_vm13, %v1296_v33 }
0x1230   :  { %v1323_v19 = vpop.f32.mrf.mxu0 }
0x1231   :  { %v1324_v46 = vadd.f32 %v1527_v29, %v1323_v19 }
0x1233   :  { %1326 = vst [vmem:[#allocation2] sm:$0x3] %v1324_v46 }
0x1234   :  { %1337 = dma.vmem_to_hbm [thread:$0]  %s1333_s26, 32, %s1335_s28, [#allocation3]  }
0x1235   :  { %1614 = dma.done.wait [#allocation3], 32  }
0x1236   :  { %1615 = vsyncadd [#allocation3], 4294967264 }
0x1237   :  { %1342 = vsyncpa [#allocation3], 1 }

</bundles_post_ra>
